<compile_context>
chip_gen: v7x
topology: tpu7x:2x2x1
jax: 0.10.0
libtpu: 0.0.40
codegen_flags: <defaults>
</compile_context>

<pallas_src>
import functools
import math

import jax
import jax.numpy as jnp
from jax import lax
from jax.experimental import pallas as pl
from jax.experimental.pallas import tpu as pltpu

LANE = 128
MAIN_DTYPE = jnp.bfloat16   # storage dtype of the inter-kernel main-branch tensor


def _round_up(n, m):
    return (n + m - 1) // m * m


def _vmem_limit_bytes():
    """Per-generation VMEM budget: ~3/4 of physical, capped at 100 MiB."""
    try:
        cap = int(getattr(pltpu.get_tpu_info(), "vmem_capacity_bytes",
                          64 * 1024 * 1024))
    except Exception:
        cap = 64 * 1024 * 1024          # conservative fallback (safe on v7x too)
    return int(min(cap * 3 // 4, 100 * 1024 * 1024))


def _mm(a, w):
    """(R0, R1, Cin) @ (Cin, Cout) on the MXU; channels stay on the lane axis."""
    r0, r1, c = a.shape
    out = jnp.dot(a.reshape(r0 * r1, c), w, preferred_element_type=jnp.float32)
    return out.reshape(r0, r1, w.shape[1])


# ---------------------------------------------------------------------------
# Kernel 1: ConvTranspose2d(3x3, stride 2, pad 1, output_pad 1) + BN + ReLU.
# Output is written in a parity-factored layout so the interleave is a free
# XLA bitcast reshape:  o[n, i, pr, j, pc*Co + c] == out[n, 2i+pr, 2j+pc, c].
# ---------------------------------------------------------------------------
def deconv_bn_relu_kernel(x_ref, w_ref, b_ref, o_ref, pad_ref):
    # x_ref: (1, H, W, Ci)   w_ref: (3, 3, Ci, Co)   b_ref: (1, Co)
    # o_ref: (1, H, 2, W, 2*Co) bf16      pad_ref: (H+1, W+1, Ci) f32 scratch
    x = x_ref[0]
    H, W, Ci = x.shape
    Co = b_ref.shape[-1]

    # far-side zero halo (re-zeroed each step: grid axis is "parallel", see header)
    pad_ref[H:H + 1, :, :] = jnp.zeros((1, W + 1, Ci), jnp.float32)
    pad_ref[:, W:W + 1, :] = jnp.zeros((H + 1, 1, Ci), jnp.float32)
    pad_ref[0:H, 0:W, :] = x
    x_r = pad_ref[0:H, 1:W + 1, :]        # x[i, j+1]   (0 past the right edge)
    x_d = pad_ref[1:H + 1, 0:W, :]        # x[i+1, j]   (0 past the bottom edge)
    x_dr = pad_ref[1:H + 1, 1:W + 1, :]   # x[i+1, j+1]
    b = b_ref[...][None]                  # (1, 1, Co)

    def emit(pr, pc, val):                # store each parity plane as soon as ready
        o_ref[0, :, pr, :, pc * Co:(pc + 1) * Co] = (
            jnp.maximum(val, 0.0).astype(o_ref.dtype))

    emit(0, 0, _mm(x, w_ref[1, 1]) + b)                                    # (2i,   2j)
    emit(0, 1, _mm(x_r, w_ref[1, 0]) + _mm(x, w_ref[1, 2]) + b)            # (2i,   2j+1)
    emit(1, 0, _mm(x_d, w_ref[0, 1]) + _mm(x, w_ref[2, 1]) + b)            # (2i+1, 2j)
    emit(1, 1, _mm(x_dr, w_ref[0, 0]) + _mm(x_d, w_ref[0, 2])
               + _mm(x_r, w_ref[2, 0]) + _mm(x, w_ref[2, 2]) + b)          # (2i+1, 2j+1)


def deconv_bn_relu_pallas(x_nhwc, w_taps, b, vmem_limit):
    N, H, W, Ci = x_nhwc.shape
    Co = w_taps.shape[-1]
    planes = pl.pallas_call(
        deconv_bn_relu_kernel,
        out_shape=jax.ShapeDtypeStruct((N, H, 2, W, 2 * Co), MAIN_DTYPE),
        grid=(N,),
        in_specs=[pl.BlockSpec((1, H, W, Ci), lambda n: (n, 0, 0, 0)),
                  pl.BlockSpec((3, 3, Ci, Co), lambda n: (0, 0, 0, 0)),
                  pl.BlockSpec((1, Co), lambda n: (0, 0))],
        out_specs=pl.BlockSpec((1, H, 2, W, 2 * Co), lambda n: (n, 0, 0, 0, 0)),
        scratch_shapes=[pltpu.VMEM((H + 1, W + 1, Ci), jnp.float32)],
        compiler_params=pltpu.CompilerParams(
            dimension_semantics=("parallel",), vmem_limit_bytes=vmem_limit),
    )(x_nhwc, w_taps, b)
    # un-factor parity: adjacent-dim merge/split only -> free bitcast reshape in XLA.
    return planes.reshape(N, 2 * H, 2 * W, Co)


# ---------------------------------------------------------------------------
# Kernel 2: fused  non_bottleneck_1d x2  +  interpolate branch  +  final add.
# ---------------------------------------------------------------------------
def fused_tail_kernel(m_ref, x_ref, nbw_ref, nbb_ref, wi_ref, bi_ref, aw_ref,
                      o_ref, pad_ref, *, interp_taps):
    # m_ref:   (1, OH, OW, C) bf16 main branch (deconv+bn+relu, interleaved)
    # x_ref:   (1, H, W, Ci)  f32 original block input (skip branch)
    # nbw_ref: (2, 4, 3, C, C)   nbb_ref: (2, 4, 1, C)   (BN folded)
    # wi_ref:  (Ci, C)   bi_ref: (1, C)   aw_ref: (OW, W) static 2-tap interp matrix
    # o_ref:   (1, OH, OW, C) f32
    # pad_ref: (OH+2, OW+2, C) f32 zero-halo scratch for the separable convs (d=1)
    a = m_ref[0].astype(jnp.float32)
    OH, OW, C = a.shape

    # halo strips (re-zeroed each step: "parallel" grid axis, see header comment)
    pad_ref[0:1, :, :] = jnp.zeros((1, OW + 2, C), jnp.float32)
    pad_ref[OH + 1:OH + 2, :, :] = jnp.zeros((1, OW + 2, C), jnp.float32)
    pad_ref[:, 0:1, :] = jnp.zeros((OH + 2, 1, C), jnp.float32)
    pad_ref[:, OW + 1:OW + 2, :] = jnp.zeros((OH + 2, 1, C), jnp.float32)

    def conv_h(v, blk, ci):               # 3x1 conv along H, "same" padding, d=1
        pad_ref[1:1 + OH, 1:1 + OW, :] = v
        up = pad_ref[0:OH, 1:1 + OW, :]
        dn = pad_ref[2:2 + OH, 1:1 + OW, :]
        out = (_mm(up, nbw_ref[blk, ci, 0]) + _mm(v, nbw_ref[blk, ci, 1])
               + _mm(dn, nbw_ref[blk, ci, 2]))
        return out + nbb_ref[blk, ci][None]

    def conv_w(v, blk, ci):               # 1x3 conv along W, "same" padding, d=1
        pad_ref[1:1 + OH, 1:1 + OW, :] = v
        lf = pad_ref[1:1 + OH, 0:OW, :]
        rt = pad_ref[1:1 + OH, 2:2 + OW, :]
        out = (_mm(lf, nbw_ref[blk, ci, 0]) + _mm(v, nbw_ref[blk, ci, 1])
               + _mm(rt, nbw_ref[blk, ci, 2]))
        return out + nbb_ref[blk, ci][None]

    def nb1d(v, blk):
        o = jnp.maximum(conv_h(v, blk, 0), 0.0)        # conv3x1_1 + relu
        o = jnp.maximum(conv_w(o, blk, 1), 0.0)        # conv1x3_1 (+bn1) + relu
        o = jnp.maximum(conv_h(o, blk, 2), 0.0)        # conv3x1_2 + relu
        o = conv_w(o, blk, 3)                          # conv1x3_2 (+bn2)
        return jnp.maximum(o + v, 0.0)                 # residual + relu

    m = nb1d(nb1d(a, 0), 1)                            # (OH, OW, C)

    # skip branch: relu(bn(conv1x1(x))) then separable bilinear 2x (align_corners).
    t = jnp.maximum(_mm(x_ref[0], wi_ref[...]) + bi_ref[...][None], 0.0)   # (H, W, C)
    aw = aw_ref[...]                                   # hoisted out of the loops
    H_src = t.shape[0]
    # W direction on the MXU: one (OW, W) x (W, C) matmul per source row.
    tw = [jnp.dot(aw, t[h], preferred_element_type=jnp.float32)
          for h in range(H_src)]                       # H values of (OW, C)
    # H direction: per-output-row 2-tap FMA fused with the final add + store.
    for oy, (y0, y1, wy) in enumerate(interp_taps):
        skip = tw[y0] if y0 == y1 else (1.0 - wy) * tw[y0] + wy * tw[y1]
        o_ref[0, oy] = m[oy] + skip


def fused_tail_pallas(main_nhwc, x_nhwc, nbw, nbb, wi, bi, aw, interp_taps,
                      vmem_limit):
    N, OH, OW, C = main_nhwc.shape
    _, H, W, Ci = x_nhwc.shape
    kern = functools.partial(fused_tail_kernel, interp_taps=interp_taps)
    return pl.pallas_call(
        kern,
        out_shape=jax.ShapeDtypeStruct((N, OH, OW, C), jnp.float32),
        grid=(N,),
        in_specs=[pl.BlockSpec((1, OH, OW, C), lambda n: (n, 0, 0, 0)),
                  pl.BlockSpec((1, H, W, Ci), lambda n: (n, 0, 0, 0)),
                  pl.BlockSpec((2, 4, 3, C, C), lambda n: (0, 0, 0, 0, 0)),
                  pl.BlockSpec((2, 4, 1, C), lambda n: (0, 0, 0, 0)),
                  pl.BlockSpec((Ci, C), lambda n: (0, 0)),
                  pl.BlockSpec((1, C), lambda n: (0, 0)),
                  pl.BlockSpec((OW, W), lambda n: (0, 0))],
        out_specs=pl.BlockSpec((1, OH, OW, C), lambda n: (n, 0, 0, 0)),
        scratch_shapes=[pltpu.VMEM((OH + 2, OW + 2, C), jnp.float32)],
        compiler_params=pltpu.CompilerParams(
            dimension_semantics=("parallel",), vmem_limit_bytes=vmem_limit),
    )(main_nhwc, x_nhwc, nbw, nbb, wi, bi, aw)


# ---------------------------------------------------------------------------
# Parameter glue (plain JAX / Python): BN folding, per-tap repacking, lane
# padding, static align_corners interpolation taps.
# ---------------------------------------------------------------------------
def _interp_matrix(n_in, n_out):
    """PyTorch bilinear align_corners=True interpolation as an (n_out, n_in) matrix."""
    src = jnp.arange(n_out) * (n_in - 1) / max(n_out - 1, 1)
    lo = jnp.clip(jnp.floor(src).astype(jnp.int32), 0, n_in - 1)
    hi = jnp.clip(lo + 1, 0, n_in - 1)
    frac = (src - lo).astype(jnp.float32)
    rows = jnp.arange(n_out)
    m = jnp.zeros((n_out, n_in), jnp.float32)
    m = m.at[rows, lo].add(1.0 - frac)
    m = m.at[rows, hi].add(frac)
    return m


def _interp_taps(n_in, n_out):
    """Static (lo, hi, frac) 2-tap align_corners weights for every output row."""
    taps = []
    for o in range(n_out):
        src = o * (n_in - 1) / max(n_out - 1, 1)
        lo = min(max(int(math.floor(src)), 0), n_in - 1)
        hi = min(lo + 1, n_in - 1)
        w = float(src - lo)
        if w == 0.0:
            hi = lo
        taps.append((lo, hi, w))
    return taps


def _pack_nb1d(q, C, Cp, eps):
    """Repack one non_bottleneck_1d block to (4, 3, Cp, Cp) taps + (4, 1, Cp) biases."""
    s1 = q["g1"] / jnp.sqrt(q["v1"] + eps)
    W2f = q["W2"] * s1[:, None, None, None]
    b2f = (q["b2"] - q["m1"]) * s1 + q["bt1"]
    s2 = q["g2"] / jnp.sqrt(q["v2"] + eps)
    W4f = q["W4"] * s2[:, None, None, None]
    b4f = (q["b4"] - q["m2"]) * s2 + q["bt2"]
    w = jnp.stack([
        jnp.transpose(q["W1"][:, :, :, 0], (2, 1, 0)),   # (3, Cin, Cout) per tap
        jnp.transpose(W2f[:, :, 0, :], (2, 1, 0)),
        jnp.transpose(q["W3"][:, :, :, 0], (2, 1, 0)),
        jnp.transpose(W4f[:, :, 0, :], (2, 1, 0)),
    ])                                                    # (4, 3, C, C)
    b = jnp.stack([q["b1"], b2f, q["b3"], b4f])           # (4, C)
    w = jnp.pad(w, ((0, 0), (0, 0), (0, Cp - C), (0, Cp - C)))
    b = jnp.pad(b, ((0, 0), (0, Cp - C))).reshape(4, 1, Cp)
    return w, b


def bilateral_upsampler_pallas(x_nchw, p, eps=1e-3):
    N, Cin, H, W = x_nchw.shape
    Cout = p["Wd"].shape[1]
    Cip, Cop = _round_up(Cin, LANE), _round_up(Cout, LANE)
    OH, OW = 2 * H, 2 * W
    vmem_limit = _vmem_limit_bytes()

    # --- deconv + bn (folded) ---
    sd = p["gd"] / jnp.sqrt(p["vd"] + eps)
    wd = p["Wd"] * sd[None, :, None, None]                       # (Cin, Cout, 3, 3)
    wd_taps = jnp.transpose(wd, (2, 3, 0, 1))                    # (3, 3, Cin, Cout)
    wd_taps = jnp.pad(wd_taps, ((0, 0), (0, 0), (0, Cip - Cin), (0, Cop - Cout)))
    bd_k = jnp.pad((p["bd"] - p["md"]) * sd + p["btd"], (0, Cop - Cout)).reshape(1, Cop)

    # --- two non_bottleneck_1d blocks (dilated=1, dropout p=0), stacked ---
    nb1_w, nb1_b = _pack_nb1d(p["nb1"], Cout, Cop, eps)
    nb2_w, nb2_b = _pack_nb1d(p["nb2"], Cout, Cop, eps)
    nbw = jnp.stack([nb1_w, nb2_w], 0)                           # (2, 4, 3, Cop, Cop)
    nbb = jnp.stack([nb1_b, nb2_b], 0)                           # (2, 4, 1, Cop)

    # --- interpolate branch: 1x1 conv (no bias) + bn (folded) ---
    si = p["gi"] / jnp.sqrt(p["vi"] + eps)
    wi_k = jnp.pad((p["Wi"][:, :, 0, 0] * si[:, None]).T,
                   ((0, Cip - Cin), (0, Cop - Cout)))            # (Cip, Cop)
    bi_k = jnp.pad(p["bti"] - p["mi"] * si, (0, Cop - Cout)).reshape(1, Cop)

    aw = _interp_matrix(W, OW)                                   # (OW, W) 2-tap matrix
    taps_h = _interp_taps(H, OH)                                 # static Python taps

    # --- run ---
    x_nhwc = jnp.transpose(x_nchw, (0, 2, 3, 1))
    x_p = jnp.pad(x_nhwc, ((0, 0), (0, 0), (0, 0), (0, Cip - Cin)))

    main = deconv_bn_relu_pallas(x_p, wd_taps, bd_k, vmem_limit)  # (N, OH, OW, Cop) bf16
    out = fused_tail_pallas(main, x_p, nbw, nbb, wi_k, bi_k, aw, taps_h, vmem_limit)

    return jnp.transpose(out[..., :Cout], (0, 3, 1, 2))          # back to NCHW, f32


# ---------------------------------------------------------------------------
# Pure-JAX NCHW reference (mirrors the PyTorch module, eval-mode BN).
# ---------------------------------------------------------------------------
def _bn_eval(x, g, b, m, v, eps):
    inv = g / jnp.sqrt(v + eps)
    return x * inv[None, :, None, None] + (b - m * inv)[None, :, None, None]


def nb1d_reference(x, q, dilated, eps=1e-3):
    def conv(x, w, b, dil_hw, pad_hw):
        y = lax.conv_general_dilated(
            x, w, window_strides=(1, 1),
            padding=((pad_hw[0], pad_hw[0]), (pad_hw[1], pad_hw[1])),
            rhs_dilation=dil_hw, dimension_numbers=("NCHW", "OIHW", "NCHW"))
        return y + b[None, :, None, None]
    o = jax.nn.relu(conv(x, q["W1"], q["b1"], (1, 1), (1, 0)))
    o = conv(o, q["W2"], q["b2"], (1, 1), (0, 1))
    o = jax.nn.relu(_bn_eval(o, q["g1"], q["bt1"], q["m1"], q["v1"], eps))
    o = jax.nn.relu(conv(o, q["W3"], q["b3"], (dilated, 1), (dilated, 0)))
    o = conv(o, q["W4"], q["b4"], (1, dilated), (0, dilated))
    o = _bn_eval(o, q["g2"], q["bt2"], q["m2"], q["v2"], eps)
    return jax.nn.relu(o + x)


def _bilinear_align_corners(x, oh, ow):
    N, C, H, W = x.shape
    ys = jnp.arange(oh) * (H - 1) / (oh - 1)
    xs = jnp.arange(ow) * (W - 1) / (ow - 1)
    y0 = jnp.clip(jnp.floor(ys).astype(jnp.int32), 0, H - 1)
    y1 = jnp.clip(y0 + 1, 0, H - 1)
    x0 = jnp.clip(jnp.floor(xs).astype(jnp.int32), 0, W - 1)
    x1 = jnp.clip(x0 + 1, 0, W - 1)
    wy = (ys - y0).astype(x.dtype)
    wx = (xs - x0).astype(x.dtype)
    v = (x[:, :, y0, :] * (1 - wy)[None, None, :, None]
         + x[:, :, y1, :] * wy[None, None, :, None])
    return (v[:, :, :, x0] * (1 - wx)[None, None, None, :]
            + v[:, :, :, x1] * wx[None, None, None, :])


def bilateral_reference(x, p, eps=1e-3):
    y = lax.conv_general_dilated(
        x, jnp.flip(p["Wd"], (2, 3)), window_strides=(1, 1),
        padding=((1, 2), (1, 2)), lhs_dilation=(2, 2),
        dimension_numbers=("NCHW", "IOHW", "NCHW")) + p["bd"][None, :, None, None]
    out = jax.nn.relu(_bn_eval(y, p["gd"], p["btd"], p["md"], p["vd"], eps))
    out = nb1d_reference(out, p["nb1"], 1, eps)
    out = nb1d_reference(out, p["nb2"], 1, eps)
    t = lax.conv_general_dilated(x, p["Wi"], (1, 1), "VALID",
                                 dimension_numbers=("NCHW", "OIHW", "NCHW"))
    t = jax.nn.relu(_bn_eval(t, p["gi"], p["bti"], p["mi"], p["vi"], eps))
    t = _bilinear_align_corners(t, out.shape[2], out.shape[3])
    return out + t


def _make_nb1d_params(key, C):
    ks = jax.random.split(key, 16)
    n = jax.random.normal
    return dict(
        W1=0.2 * n(ks[0], (C, C, 3, 1), jnp.float32), b1=0.1 * n(ks[1], (C,), jnp.float32),
        W2=0.2 * n(ks[2], (C, C, 1, 3), jnp.float32), b2=0.1 * n(ks[3], (C,), jnp.float32),
        W3=0.2 * n(ks[4], (C, C, 3, 1), jnp.float32), b3=0.1 * n(ks[5], (C,), jnp.float32),
        W4=0.2 * n(ks[6], (C, C, 1, 3), jnp.float32), b4=0.1 * n(ks[7], (C,), jnp.float32),
        g1=1.0 + 0.1 * n(ks[8], (C,), jnp.float32), bt1=0.1 * n(ks[9], (C,), jnp.float32),
        m1=0.05 * n(ks[10], (C,), jnp.float32),
        v1=jax.random.uniform(ks[11], (C,), jnp.float32, 0.5, 1.5),
        g2=1.0 + 0.1 * n(ks[12], (C,), jnp.float32), bt2=0.1 * n(ks[13], (C,), jnp.float32),
        m2=0.05 * n(ks[14], (C,), jnp.float32),
        v2=jax.random.uniform(ks[15], (C,), jnp.float32, 0.5, 1.5),
    )


if __name__ == "__main__":
    N, Cin, Cout, H, W = 2, 16, 8, 8, 8
    eps = 1e-3
    k = jax.random.split(jax.random.PRNGKey(0), 16)
    n = jax.random.normal
    p = dict(
        Wd=0.2 * n(k[0], (Cin, Cout, 3, 3), jnp.float32),
        bd=0.1 * n(k[1], (Cout,), jnp.float32),
        gd=1.0 + 0.1 * n(k[2], (Cout,), jnp.float32),
        btd=0.1 * n(k[3], (Cout,), jnp.float32),
        md=0.05 * n(k[4], (Cout,), jnp.float32),
        vd=jax.random.uniform(k[5], (Cout,), jnp.float32, 0.5, 1.5),
        Wi=0.2 * n(k[6], (Cout, Cin, 1, 1), jnp.float32),
        gi=1.0 + 0.1 * n(k[7], (Cout,), jnp.float32),
        bti=0.1 * n(k[8], (Cout,), jnp.float32),
        mi=0.05 * n(k[9], (Cout,), jnp.float32),
        vi=jax.random.uniform(k[10], (Cout,), jnp.float32, 0.5, 1.5),
        nb1=_make_nb1d_params(k[11], Cout),
        nb2=_make_nb1d_params(k[12], Cout),
    )
    x = jax.random.normal(k[13], (N, Cin, H, W), jnp.float32)

    out = jax.block_until_ready(bilateral_upsampler_pallas(x, p, eps))
    ref = jax.block_until_ready(bilateral_reference(x, p, eps))
    assert out.shape == ref.shape == (N, Cout, 2 * H, 2 * W), (out.shape, ref.shape)
    err = float(jnp.max(jnp.abs(out - ref)))
    # Tolerance loosened vs the f32-only version because the main-branch tensor is
    # stored in bf16 between the two kernels (review item); compute stays f32.
    assert jnp.allclose(out, ref, rtol=5e-2, atol=5e-2), err
    print("KERNEL_OK")
</pallas_src>

<mosaic_0001>
module attributes {stable_mosaic.version = 11 : i64} {
  func.func @deconv_bn_relu_kernel(%arg0: i32, %arg1: memref<1x8x8x128xf32, #tpu.memory_space<vmem>>, %arg2: memref<3x3x128x128xf32, #tpu.memory_space<vmem>>, %arg3: memref<1x128xf32, #tpu.memory_space<vmem>>, %arg4: memref<1x8x2x8x256xbf16, #tpu.memory_space<vmem>>, %arg5: memref<9x9x128xf32, #tpu.memory_space<vmem>>) attributes {dimension_semantics = [#tpu.dimension_semantics<parallel>], iteration_bounds = array<i64: 2>, scalar_prefetch = 0 : i64, scratch_operands = 1 : i64, tpu.core_type = #tpu.core_type<tc>, window_params = [{transform_indices = @transform_0, window_bounds = array<i64: 1, 8, 8, 128>}, {pipeline_mode = #tpu.pipeline_mode<synchronous>, transform_indices = @transform_1, window_bounds = array<i64: 3, 3, 128, 128>}, {pipeline_mode = #tpu.pipeline_mode<synchronous>, transform_indices = @transform_2, window_bounds = array<i64: 1, 128>}, {transform_indices = @transform_3, window_bounds = array<i64: 1, 8, 2, 8, 256>}]} {
    %c0 = arith.constant 0 : index
    %c0_0 = arith.constant 0 : index
    %c0_1 = arith.constant 0 : index
    %c0_2 = arith.constant 0 : index
    %0 = vector.load %arg1[%c0, %c0_0, %c0_1, %c0_2] : memref<1x8x8x128xf32, #tpu.memory_space<vmem>>, vector<1x8x8x128xf32>
    %1 = vector.shape_cast %0 : vector<1x8x8x128xf32> to vector<8x8x128xf32>
    %cst = arith.constant 0.000000e+00 : f32
    %2 = vector.broadcast %cst : f32 to vector<1x9x128xf32>
    %c8 = arith.constant 8 : index
    %c0_3 = arith.constant 0 : index
    %c0_4 = arith.constant 0 : index
    %3 = vector.load %arg5[%c8, %c0_3, %c0_4] : memref<9x9x128xf32, #tpu.memory_space<vmem>>, vector<1x9x128xf32>
    tpu.vector_store %arg5[%c8, %c0_3, %c0_4], %2 {strides = array<i32>} : memref<9x9x128xf32, #tpu.memory_space<vmem>>, vector<1x9x128xf32>,
    %cst_5 = arith.constant 0.000000e+00 : f32
    %4 = vector.broadcast %cst_5 : f32 to vector<9x1x128xf32>
    %c0_6 = arith.constant 0 : index
    %c8_7 = arith.constant 8 : index
    %c0_8 = arith.constant 0 : index
    %5 = vector.load %arg5[%c0_6, %c8_7, %c0_8] : memref<9x9x128xf32, #tpu.memory_space<vmem>>, vector<9x1x128xf32>
    tpu.vector_store %arg5[%c0_6, %c8_7, %c0_8], %4 {strides = array<i32>} : memref<9x9x128xf32, #tpu.memory_space<vmem>>, vector<9x1x128xf32>,
    %c0_9 = arith.constant 0 : index
    %c0_10 = arith.constant 0 : index
    %c0_11 = arith.constant 0 : index
    %6 = vector.load %arg5[%c0_9, %c0_10, %c0_11] : memref<9x9x128xf32, #tpu.memory_space<vmem>>, vector<8x8x128xf32>
    tpu.vector_store %arg5[%c0_9, %c0_10, %c0_11], %1 {strides = array<i32>} : memref<9x9x128xf32, #tpu.memory_space<vmem>>, vector<8x8x128xf32>,
    %c0_12 = arith.constant 0 : index
    %c1 = arith.constant 1 : index
    %c0_13 = arith.constant 0 : index
    %7 = vector.load %arg5[%c0_12, %c1, %c0_13] : memref<9x9x128xf32, #tpu.memory_space<vmem>>, vector<8x8x128xf32>
    %c1_14 = arith.constant 1 : index
    %c0_15 = arith.constant 0 : index
    %c0_16 = arith.constant 0 : index
    %8 = vector.load %arg5[%c1_14, %c0_15, %c0_16] : memref<9x9x128xf32, #tpu.memory_space<vmem>>, vector<8x8x128xf32>
    %c1_17 = arith.constant 1 : index
    %c1_18 = arith.constant 1 : index
    %c0_19 = arith.constant 0 : index
    %9 = vector.load %arg5[%c1_17, %c1_18, %c0_19] : memref<9x9x128xf32, #tpu.memory_space<vmem>>, vector<8x8x128xf32>
    %c0_20 = arith.constant 0 : index
    %c0_21 = arith.constant 0 : index
    %10 = vector.load %arg3[%c0_20, %c0_21] : memref<1x128xf32, #tpu.memory_space<vmem>>, vector<1x128xf32>
    %11 = vector.shape_cast %10 : vector<1x128xf32> to vector<1x1x128xf32>
    %c1_22 = arith.constant 1 : index
    %c1_23 = arith.constant 1 : index
    %c0_24 = arith.constant 0 : index
    %c0_25 = arith.constant 0 : index
    %12 = vector.load %arg2[%c1_22, %c1_23, %c0_24, %c0_25] : memref<3x3x128x128xf32, #tpu.memory_space<vmem>>, vector<1x1x128x128xf32>
    %13 = vector.shape_cast %12 : vector<1x1x128x128xf32> to vector<128x128xf32>
    %14 = vector.shape_cast %1 : vector<8x8x128xf32> to vector<64x128xf32>
    %cst_26 = arith.constant dense<0.000000e+00> : vector<64x128xf32>
    %15 = tpu.matmul %14, %13, %cst_26 {dimension_numbers = #tpu.dot_dimension_numbers<[1], [0], [0], [1], [0, 0, 1, 1], [], []>} : vector<64x128xf32>, vector<128x128xf32>, vector<64x128xf32> -> vector<64x128xf32>
    %16 = vector.shape_cast %15 : vector<64x128xf32> to vector<8x8x128xf32>
    %17 = vector.broadcast %11 : vector<1x1x128xf32> to vector<8x8x128xf32>
    %18 = arith.addf %16, %17 : vector<8x8x128xf32>
    %cst_27 = arith.constant 0.000000e+00 : f32
    %19 = vector.broadcast %cst_27 : f32 to vector<8x8x128xf32>
    %20 = arith.maximumf %18, %19 : vector<8x8x128xf32>
    %21 = arith.truncf %20 : vector<8x8x128xf32> to vector<8x8x128xbf16>
    %c0_28 = arith.constant 0 : index
    %c0_29 = arith.constant 0 : index
    %c0_30 = arith.constant 0 : index
    %c0_31 = arith.constant 0 : index
    %c0_32 = arith.constant 0 : index
    %22 = vector.load %arg4[%c0_28, %c0_29, %c0_30, %c0_31, %c0_32] : memref<1x8x2x8x256xbf16, #tpu.memory_space<vmem>>, vector<1x8x1x8x128xbf16>
    %23 = vector.shape_cast %22 : vector<1x8x1x8x128xbf16> to vector<8x8x128xbf16>
    %24 = vector.shape_cast %21 : vector<8x8x128xbf16> to vector<1x8x1x8x128xbf16>
    tpu.vector_store %arg4[%c0_28, %c0_29, %c0_30, %c0_31, %c0_32], %24 {strides = array<i32>} : memref<1x8x2x8x256xbf16, #tpu.memory_space<vmem>>, vector<1x8x1x8x128xbf16>,
    %c1_33 = arith.constant 1 : index
    %c0_34 = arith.constant 0 : index
    %c0_35 = arith.constant 0 : index
    %c0_36 = arith.constant 0 : index
    %25 = vector.load %arg2[%c1_33, %c0_34, %c0_35, %c0_36] : memref<3x3x128x128xf32, #tpu.memory_space<vmem>>, vector<1x1x128x128xf32>
    %26 = vector.shape_cast %25 : vector<1x1x128x128xf32> to vector<128x128xf32>
    %27 = vector.shape_cast %7 : vector<8x8x128xf32> to vector<64x128xf32>
    %cst_37 = arith.constant dense<0.000000e+00> : vector<64x128xf32>
    %28 = tpu.matmul %27, %26, %cst_37 {dimension_numbers = #tpu.dot_dimension_numbers<[1], [0], [0], [1], [0, 0, 1, 1], [], []>} : vector<64x128xf32>, vector<128x128xf32>, vector<64x128xf32> -> vector<64x128xf32>
    %29 = vector.shape_cast %28 : vector<64x128xf32> to vector<8x8x128xf32>
    %c1_38 = arith.constant 1 : index
    %c2 = arith.constant 2 : index
    %c0_39 = arith.constant 0 : index
    %c0_40 = arith.constant 0 : index
    %30 = vector.load %arg2[%c1_38, %c2, %c0_39, %c0_40] : memref<3x3x128x128xf32, #tpu.memory_space<vmem>>, vector<1x1x128x128xf32>
    %31 = vector.shape_cast %30 : vector<1x1x128x128xf32> to vector<128x128xf32>
    %32 = vector.shape_cast %1 : vector<8x8x128xf32> to vector<64x128xf32>
    %cst_41 = arith.constant dense<0.000000e+00> : vector<64x128xf32>
    %33 = tpu.matmul %32, %31, %cst_41 {dimension_numbers = #tpu.dot_dimension_numbers<[1], [0], [0], [1], [0, 0, 1, 1], [], []>} : vector<64x128xf32>, vector<128x128xf32>, vector<64x128xf32> -> vector<64x128xf32>
    %34 = vector.shape_cast %33 : vector<64x128xf32> to vector<8x8x128xf32>
    %35 = arith.addf %29, %34 : vector<8x8x128xf32>
    %36 = vector.broadcast %11 : vector<1x1x128xf32> to vector<8x8x128xf32>
    %37 = arith.addf %35, %36 : vector<8x8x128xf32>
    %cst_42 = arith.constant 0.000000e+00 : f32
    %38 = vector.broadcast %cst_42 : f32 to vector<8x8x128xf32>
    %39 = arith.maximumf %37, %38 : vector<8x8x128xf32>
    %40 = arith.truncf %39 : vector<8x8x128xf32> to vector<8x8x128xbf16>
    %c0_43 = arith.constant 0 : index
    %c0_44 = arith.constant 0 : index
    %c0_45 = arith.constant 0 : index
    %c0_46 = arith.constant 0 : index
    %c128 = arith.constant 128 : index
    %41 = vector.load %arg4[%c0_43, %c0_44, %c0_45, %c0_46, %c128] : memref<1x8x2x8x256xbf16, #tpu.memory_space<vmem>>, vector<1x8x1x8x128xbf16>
    %42 = vector.shape_cast %41 : vector<1x8x1x8x128xbf16> to vector<8x8x128xbf16>
    %43 = vector.shape_cast %40 : vector<8x8x128xbf16> to vector<1x8x1x8x128xbf16>
    tpu.vector_store %arg4[%c0_43, %c0_44, %c0_45, %c0_46, %c128], %43 {strides = array<i32>} : memref<1x8x2x8x256xbf16, #tpu.memory_space<vmem>>, vector<1x8x1x8x128xbf16>,
    %c0_47 = arith.constant 0 : index
    %c1_48 = arith.constant 1 : index
    %c0_49 = arith.constant 0 : index
    %c0_50 = arith.constant 0 : index
    %44 = vector.load %arg2[%c0_47, %c1_48, %c0_49, %c0_50] : memref<3x3x128x128xf32, #tpu.memory_space<vmem>>, vector<1x1x128x128xf32>
    %45 = vector.shape_cast %44 : vector<1x1x128x128xf32> to vector<128x128xf32>
    %46 = vector.shape_cast %8 : vector<8x8x128xf32> to vector<64x128xf32>
    %cst_51 = arith.constant dense<0.000000e+00> : vector<64x128xf32>
    %47 = tpu.matmul %46, %45, %cst_51 {dimension_numbers = #tpu.dot_dimension_numbers<[1], [0], [0], [1], [0, 0, 1, 1], [], []>} : vector<64x128xf32>, vector<128x128xf32>, vector<64x128xf32> -> vector<64x128xf32>
    %48 = vector.shape_cast %47 : vector<64x128xf32> to vector<8x8x128xf32>
    %c2_52 = arith.constant 2 : index
    %c1_53 = arith.constant 1 : index
    %c0_54 = arith.constant 0 : index
    %c0_55 = arith.constant 0 : index
    %49 = vector.load %arg2[%c2_52, %c1_53, %c0_54, %c0_55] : memref<3x3x128x128xf32, #tpu.memory_space<vmem>>, vector<1x1x128x128xf32>
    %50 = vector.shape_cast %49 : vector<1x1x128x128xf32> to vector<128x128xf32>
    %51 = vector.shape_cast %1 : vector<8x8x128xf32> to vector<64x128xf32>
    %cst_56 = arith.constant dense<0.000000e+00> : vector<64x128xf32>
    %52 = tpu.matmul %51, %50, %cst_56 {dimension_numbers = #tpu.dot_dimension_numbers<[1], [0], [0], [1], [0, 0, 1, 1], [], []>} : vector<64x128xf32>, vector<128x128xf32>, vector<64x128xf32> -> vector<64x128xf32>
    %53 = vector.shape_cast %52 : vector<64x128xf32> to vector<8x8x128xf32>
    %54 = arith.addf %48, %53 : vector<8x8x128xf32>
    %55 = vector.broadcast %11 : vector<1x1x128xf32> to vector<8x8x128xf32>
    %56 = arith.addf %54, %55 : vector<8x8x128xf32>
    %cst_57 = arith.constant 0.000000e+00 : f32
    %57 = vector.broadcast %cst_57 : f32 to vector<8x8x128xf32>
    %58 = arith.maximumf %56, %57 : vector<8x8x128xf32>
    %59 = arith.truncf %58 : vector<8x8x128xf32> to vector<8x8x128xbf16>
    %c0_58 = arith.constant 0 : index
    %c0_59 = arith.constant 0 : index
    %c1_60 = arith.constant 1 : index
    %c0_61 = arith.constant 0 : index
    %c0_62 = arith.constant 0 : index
    %60 = vector.load %arg4[%c0_58, %c0_59, %c1_60, %c0_61, %c0_62] : memref<1x8x2x8x256xbf16, #tpu.memory_space<vmem>>, vector<1x8x1x8x128xbf16>
    %61 = vector.shape_cast %60 : vector<1x8x1x8x128xbf16> to vector<8x8x128xbf16>
    %62 = vector.shape_cast %59 : vector<8x8x128xbf16> to vector<1x8x1x8x128xbf16>
    tpu.vector_store %arg4[%c0_58, %c0_59, %c1_60, %c0_61, %c0_62], %62 {strides = array<i32>} : memref<1x8x2x8x256xbf16, #tpu.memory_space<vmem>>, vector<1x8x1x8x128xbf16>,
    %c0_63 = arith.constant 0 : index
    %c0_64 = arith.constant 0 : index
    %c0_65 = arith.constant 0 : index
    %c0_66 = arith.constant 0 : index
    %63 = vector.load %arg2[%c0_63, %c0_64, %c0_65, %c0_66] : memref<3x3x128x128xf32, #tpu.memory_space<vmem>>, vector<1x1x128x128xf32>
    %64 = vector.shape_cast %63 : vector<1x1x128x128xf32> to vector<128x128xf32>
    %65 = vector.shape_cast %9 : vector<8x8x128xf32> to vector<64x128xf32>
    %cst_67 = arith.constant dense<0.000000e+00> : vector<64x128xf32>
    %66 = tpu.matmul %65, %64, %cst_67 {dimension_numbers = #tpu.dot_dimension_numbers<[1], [0], [0], [1], [0, 0, 1, 1], [], []>} : vector<64x128xf32>, vector<128x128xf32>, vector<64x128xf32> -> vector<64x128xf32>
    %67 = vector.shape_cast %66 : vector<64x128xf32> to vector<8x8x128xf32>
    %c0_68 = arith.constant 0 : index
    %c2_69 = arith.constant 2 : index
    %c0_70 = arith.constant 0 : index
    %c0_71 = arith.constant 0 : index
    %68 = vector.load %arg2[%c0_68, %c2_69, %c0_70, %c0_71] : memref<3x3x128x128xf32, #tpu.memory_space<vmem>>, vector<1x1x128x128xf32>
    %69 = vector.shape_cast %68 : vector<1x1x128x128xf32> to vector<128x128xf32>
    %70 = vector.shape_cast %8 : vector<8x8x128xf32> to vector<64x128xf32>
    %cst_72 = arith.constant dense<0.000000e+00> : vector<64x128xf32>
    %71 = tpu.matmul %70, %69, %cst_72 {dimension_numbers = #tpu.dot_dimension_numbers<[1], [0], [0], [1], [0, 0, 1, 1], [], []>} : vector<64x128xf32>, vector<128x128xf32>, vector<64x128xf32> -> vector<64x128xf32>
    %72 = vector.shape_cast %71 : vector<64x128xf32> to vector<8x8x128xf32>
    %73 = arith.addf %67, %72 : vector<8x8x128xf32>
    %c2_73 = arith.constant 2 : index
    %c0_74 = arith.constant 0 : index
    %c0_75 = arith.constant 0 : index
    %c0_76 = arith.constant 0 : index
    %74 = vector.load %arg2[%c2_73, %c0_74, %c0_75, %c0_76] : memref<3x3x128x128xf32, #tpu.memory_space<vmem>>, vector<1x1x128x128xf32>
    %75 = vector.shape_cast %74 : vector<1x1x128x128xf32> to vector<128x128xf32>
    %76 = vector.shape_cast %7 : vector<8x8x128xf32> to vector<64x128xf32>
    %cst_77 = arith.constant dense<0.000000e+00> : vector<64x128xf32>
    %77 = tpu.matmul %76, %75, %cst_77 {dimension_numbers = #tpu.dot_dimension_numbers<[1], [0], [0], [1], [0, 0, 1, 1], [], []>} : vector<64x128xf32>, vector<128x128xf32>, vector<64x128xf32> -> vector<64x128xf32>
    %78 = vector.shape_cast %77 : vector<64x128xf32> to vector<8x8x128xf32>
    %79 = arith.addf %73, %78 : vector<8x8x128xf32>
    %c2_78 = arith.constant 2 : index
    %c2_79 = arith.constant 2 : index
    %c0_80 = arith.constant 0 : index
    %c0_81 = arith.constant 0 : index
    %80 = vector.load %arg2[%c2_78, %c2_79, %c0_80, %c0_81] : memref<3x3x128x128xf32, #tpu.memory_space<vmem>>, vector<1x1x128x128xf32>
    %81 = vector.shape_cast %80 : vector<1x1x128x128xf32> to vector<128x128xf32>
    %82 = vector.shape_cast %1 : vector<8x8x128xf32> to vector<64x128xf32>
    %cst_82 = arith.constant dense<0.000000e+00> : vector<64x128xf32>
    %83 = tpu.matmul %82, %81, %cst_82 {dimension_numbers = #tpu.dot_dimension_numbers<[1], [0], [0], [1], [0, 0, 1, 1], [], []>} : vector<64x128xf32>, vector<128x128xf32>, vector<64x128xf32> -> vector<64x128xf32>
    %84 = vector.shape_cast %83 : vector<64x128xf32> to vector<8x8x128xf32>
    %85 = arith.addf %79, %84 : vector<8x8x128xf32>
    %86 = vector.broadcast %11 : vector<1x1x128xf32> to vector<8x8x128xf32>
    %87 = arith.addf %85, %86 : vector<8x8x128xf32>
    %cst_83 = arith.constant 0.000000e+00 : f32
    %88 = vector.broadcast %cst_83 : f32 to vector<8x8x128xf32>
    %89 = arith.maximumf %87, %88 : vector<8x8x128xf32>
    %90 = arith.truncf %89 : vector<8x8x128xf32> to vector<8x8x128xbf16>
    %c0_84 = arith.constant 0 : index
    %c0_85 = arith.constant 0 : index
    %c1_86 = arith.constant 1 : index
    %c0_87 = arith.constant 0 : index
    %c128_88 = arith.constant 128 : index
    %91 = vector.load %arg4[%c0_84, %c0_85, %c1_86, %c0_87, %c128_88] : memref<1x8x2x8x256xbf16, #tpu.memory_space<vmem>>, vector<1x8x1x8x128xbf16>
    %92 = vector.shape_cast %91 : vector<1x8x1x8x128xbf16> to vector<8x8x128xbf16>
    %93 = vector.shape_cast %90 : vector<8x8x128xbf16> to vector<1x8x1x8x128xbf16>
    tpu.vector_store %arg4[%c0_84, %c0_85, %c1_86, %c0_87, %c128_88], %93 {strides = array<i32>} : memref<1x8x2x8x256xbf16, #tpu.memory_space<vmem>>, vector<1x8x1x8x128xbf16>,
    return
  }
  func.func @transform_0(%arg0: i32) -> (i32, i32, i32, i32) {
    %c0_i32 = arith.constant 0 : i32
    %c0_i32_0 = arith.constant 0 : i32
    %c0_i32_1 = arith.constant 0 : i32
    %c0_i32_2 = arith.constant 0 : i32
    return %arg0, %c0_i32, %c0_i32_0, %c0_i32_1 : i32, i32, i32, i32
  }
  func.func @transform_1(%arg0: i32) -> (i32, i32, i32, i32) {
    %c0_i32 = arith.constant 0 : i32
    %c0_i32_0 = arith.constant 0 : i32
    %c0_i32_1 = arith.constant 0 : i32
    %c0_i32_2 = arith.constant 0 : i32
    %c0_i32_3 = arith.constant 0 : i32
    return %c0_i32, %c0_i32_0, %c0_i32_1, %c0_i32_2 : i32, i32, i32, i32
  }
  func.func @transform_2(%arg0: i32) -> (i32, i32) {
    %c0_i32 = arith.constant 0 : i32
    %c0_i32_0 = arith.constant 0 : i32
    %c0_i32_1 = arith.constant 0 : i32
    return %c0_i32, %c0_i32_0 : i32, i32
  }
  func.func @transform_3(%arg0: i32) -> (i32, i32, i32, i32, i32) {
    %c0_i32 = arith.constant 0 : i32
    %c0_i32_0 = arith.constant 0 : i32
    %c0_i32_1 = arith.constant 0 : i32
    %c0_i32_2 = arith.constant 0 : i32
    %c0_i32_3 = arith.constant 0 : i32
    return %arg0, %c0_i32, %c0_i32_0, %c0_i32_1, %c0_i32_2 : i32, i32, i32, i32, i32
  }
}

</mosaic_0001>

<bundles_post_ra>
// kernel: tpu_custom_call.1
= control target key start
LH: loop header
LB: loop body
LE: loop exit
PB: predicated region body
PF: predicated region fallthrough
CT: control target
= control target key end

     0   :  { %8 = vsyncpa [#allocation4], 0  ;;  %s3250_s0 = inlined_call_operand.hbm [shape: f32[2,8,8,128], index: 0, kind: input, shape index: {}]   ;;  %s3251_s1 = inlined_call_operand.hbm [shape: f32[3,3,128,128], index: 1, kind: input, shape index: {}]   ;;  %s3252_s2 = inlined_call_operand.vmem [shape: f32[1,128], index: 2, kind: input, shape index: {}]   ;;  %s3253_s3 = inlined_call_operand.hbm [shape: bf16[2,8,2,8,256], index: 3, kind: output, shape index: {}]  }
   0x1   :  { %10 = vsyncpa [#allocation4 + $0x1], 0 }
   0x2   :  { %11 = vsyncpa [#allocation7], 0 }
   0x3   :  { %12 = vsyncpa [#allocation5], 0 }
   0x4   :  { %14 = vsyncpa [#allocation5 + $0x1], 0  ;;  %s2838_s12 = smov 0   ;;  %s2840_s13 = smov 0  }
   0x5   :  { %s2842_s14 = smov 0   ;;  %s2844_s15 = smov 0  }
   0x6 LB: > { %s2859_s16 = sadd.s32 4294967295, %s2808_s15   ;;  %s1627_s17 = sadd.s32 4294967294, %s2808_s15   ;;  %s2808_s15 = sphi %s2844_s15, %s3273_s15   ;;  %s2804_s14 = sphi %s2842_s14, %s3272_s14   ;;  %s2800_s13 = sphi %s2840_s13, %s3271_s13   ;;  %s2796_s12 = sphi %s2838_s12, %s3270_s12  }
   0x7   : > { %p40_p0 = scmp.ne.s32.totalorder %s2800_s13, %s2796_s12  ;;  %p3254_p1 = scmp.eq.s32.totalorder %s2859_s16, 0 }
   0x8   : > { %p112_p3 = scmp.eq.s32.totalorder %s1627_s17, 1  ;;  %p1628_p5 = scmp.ge.s32.totalorder %s2808_s15, 1 }
   0x9   : > { %p2868_p4 = por %p3254_p1, %p40_p0  ;;  %p119_p7 = scmp.lt.s32.totalorder %s2808_s15, 3 }
   0xa   : > { %p2873_p6 = por %p112_p3, %p40_p0  ;;  %s2810_s21 = smov [#allocation6]  }
   0xb   : > { %s3257_s18 = scalar_select %p2868_p4, 1, 0 }
   0xc   : > { %s3258_s19 = scalar_select %p2873_p6, 1, 0 }
   0xd   : > { %p2878_p8 = pnand %p1628_p5, %p119_p7  ;;  %s131_s22 = sshll.u32 %s2810_s21, 4  ;;  %s2882_s22 = int_to_ptr.vmem [resolvable:$true] %s131_s22 }
   0xe   : > { %s2894_s24 = sadd.s32 1, %s2808_s15   ;;  %s27_s25 = sadd.s32 1, %s2804_s14 }
   0xf   : > { %s3259_s20 = scalar_select %p2878_p8, 1, 0 }
  0x10   : > { %p2626_p9 = pneg %p2878_p8  ;;  %s24_s26 = ssub.s32 %s2808_s15, %s2894_s24 }
  0x11   : > { %s2680_s29 = scalar_lea.hbm %s3251_s1, 18432 }
  0x12   : > { %p2889_p11 = pnand %p2626_p9, %p3254_p1  ;;  %p2681_p12 = scmp.ne.s32.totalorder %s3251_s1, %s2680_s29 }
  0x13   : > { %p2687_p5 = scmp.lt.u32.totalorder %s2680_s29, %s3251_s1 }
  0x14   : > { %p2682_p13 = pneg %p2889_p11 }
  0x16   : > { %p2683_p0 = pnand %p2682_p13, %p2681_p12 }
  0x18   : > { %p2684_p3 = pneg %p2683_p0 }
  0x1a   : > { %p2689_p7 = pnand %p2687_p5, %p2684_p3 }
  0x1c   : > { %2692 = shalt.err (!%p2689_p7)
}
  0x1d   : > { %s2693_s7 = scalar_lea.vmem %s2882_s22, 18432  ;;  %p2701_p2 = scmp.lt.s32.totalorder %s2882_s22, %s2882_s22 }
  0x1e   : > { %p2694_p9 = scmp.ne.s32.totalorder %s2882_s22, %s2693_s7  ;;  %p2702_p6 = scmp.lt.s32.totalorder %s2693_s7, %s2693_s7 }
  0x20   : > { %p2696_p10 = pnand %p2694_p9, %p2682_p13  ;;  %p2703_p4 = por %p2702_p6, %p2701_p2 }
  0x22   : > { %p2697_p1 = pneg %p2696_p10 }
  0x24   : > { %p2704_p8 = pnand %p2703_p4, %p2697_p1 }
  0x26   : > { %2707 = shalt.err (!%p2704_p8)
}
  0x27   : > { %s2811_s8 = smov 128   ;;  %s2812_s9 = smov 8  }
  0x28   : > { %2629 = dma.hbm_to_vmem [thread:$0]  (!%p2889_p11), %s3251_s1, 18432, %s2882_s22, [#allocation7], %s2811_s8, %s2811_s8, %s2812_s9  }
  0x29   : > { %p25_p1 = scmp.eq.s32.totalorder %s24_s26, 0  ;;  %p34_p2 = scmp.ne.s32.totalorder %s2804_s14, %s2800_s13 }
  0x2a   : > { %p35_p4 = scmp.eq.s32.totalorder %s2808_s15, 0  ;;  %p2639_p6 = scmp.lt.s32.totalorder %s2808_s15, 2 }
  0x2b   : > { %s2928_s17 = scalar_select %p25_p1, %s2804_s14, %s27_s25  }
  0x2c   : > { %p36_p8 = por %p35_p4, %p34_p2  ;;  %p3261_p10 = scmp.eq.s32.totalorder %s2859_s16, 1 }
  0x2d   : > { %s148_s23 = sand.u32 1, %s2804_s14   ;;  %s1660_s27 = sshll.u32 %s2808_s15, 10 }
  0x2e   : > { %p2932_p12 = por %p3261_p10, %p34_p2  ;;  %s1631_s28 = sshll.u32 %s148_s23, 6 }
  0x2f   : > { %s2941_s4 = scalar_lea.hbm %s3250_s0, %s1660_s27  ;;  %s152_s22 = scalar_lea.vmem [#allocation3], %s1631_s28 }
  0x30   : > { %s159_s25 = sshll.u32 %s152_s22, 4  ;;  %p2943_p11 = pnand %p2639_p6, %p36_p8  ;;  %s2947_s25 = int_to_ptr.vmem [resolvable:$true] %s159_s25 }
  0x31   : > { %s2949_s5 = scalar_lea.sflag [#allocation4], %s148_s23  ;;  %s2708_s6 = scalar_lea.hbm %s2941_s4, 1024 }
  0x32   : > { %p2709_p13 = scmp.ne.s32.totalorder %s2941_s4, %s2708_s6  ;;  %p2710_p0 = pneg %p2943_p11 }
  0x33   : > { %s2713_s11 = scalar_lea.hbm %s3250_s0, 2048  ;;  %p2714_p7 = scmp.lt.u32.totalorder %s2941_s4, %s3250_s0 }
  0x34   : > { %p2711_p3 = pnand %p2710_p0, %p2709_p13  ;;  %p2715_p9 = scmp.lt.u32.totalorder %s2713_s11, %s2708_s6 }
  0x35   : > { %p2717_p2 = scmp.lt.u32.totalorder %s2708_s6, %s2941_s4 }
  0x36   : > { %p2712_p5 = pneg %p2711_p3  ;;  %p2716_p1 = por %p2715_p9, %p2714_p7 }
  0x38   : > { %p2718_p4 = por %p2717_p2, %p2716_p1 }
  0x3a   : > { %p2719_p6 = pnand %p2718_p4, %p2712_p5 }
  0x3c   : > { %2722 = shalt.err (!%p2719_p6)
}
  0x3d   : > { %s2723_s23 = scalar_lea.vmem %s2947_s25, 1024  ;;  %s2813_s29 = smov [#allocation3]  }
  0x3e   : > { %p2724_p8 = scmp.ne.s32.totalorder %s2947_s25, %s2723_s23  ;;  %s2728_s30 = sshll.u32 %s2813_s29, 4  ;;  %s2729_s30 = int_to_ptr.vmem [resolvable:$false] %s2728_s30 }
  0x3f   : > { %s2730_s22 = scalar_lea.vmem %s2729_s30, 2048  ;;  %p2731_p3 = scmp.lt.s32.totalorder %s2947_s25, %s2729_s30 }
  0x40   : > { %p2726_p10 = pnand %p2724_p8, %p2710_p0  ;;  %p2732_p7 = scmp.lt.s32.totalorder %s2730_s22, %s2723_s23 }
  0x42   : > { %p2727_p13 = pneg %p2726_p10  ;;  %p2733_p9 = por %p2732_p7, %p2731_p3 }
  0x44   : > { %p2734_p1 = pnand %p2733_p9, %p2727_p13 }
  0x46   : > { %2737 = shalt.err (!%p2734_p1)
}
  0x47   : > { %2633 = dma.hbm_to_vmem [thread:$0]  (!%p2943_p11), %s2941_s4, 1024, %s2947_s25, %s2949_s5, %s2811_s8, %s2811_s8, %s2812_s9  }
  0x48   : > { %p3264_p0 = scmp.ne.s32.totalorder %s3259_s20, 0 }
  0x49   : > { %s2983_s6 = sand.u32 (!%p3264_p0), 1, %s2800_s13   ;;  %p3265_p5 = scmp.ne.s32.totalorder (!%p3264_p0), %s3257_s18, 0 }
  0x4a   : > { %171 = sbr.rel (%p3264_p0) target bundleno = 488 (0x1e8), region = 32  ;;  %s1635_s7 = sshll.u32 (!%p3264_p0), %s2983_s6, 6 }
  0x4b   : > { %s174_s10 = scalar_lea.sflag (!%p3264_p0), [#allocation4], %s2983_s6  ;;  %s2987_s11 = scalar_lea.vmem (!%p3264_p0), [#allocation3], %s1635_s7 }
  0x51   : > { %2783 = dma.done.wait (%p3265_p5), %s174_s10, 1024  }
  0x52   : > { %2785 = vsyncadd (%p3265_p5), %s174_s10, 4294966272  ;;  %p3266_p11 = scmp.eq.s32.totalorder %s2859_s16, 0 }
  0x54   : > { %2787 = dma.done.wait (%p3266_p11), [#allocation7], 18432   ;;  %p3267_p2 = pmov %p3266_p11 }
  0x55   : > { %v2814_v0 = vmov 0.0   ;;  %v259_v1 = vld [vmem:[#allocation6 + $0x200] sm:$0xff]  ;;  %v260_v2 = vld [vmem:[#allocation6 + $0x208] sm:$0xff]  ;;  %v261_v6 = vld [vmem:[#allocation6 + $0x210] sm:$0xff]  ;;  %s1637_s8 = sshll.u32 %s2983_s6, 7  ;;  %s1661_s4 = sshll.u32 %s2859_s16, 11 }
  0x56   : > { %2789 = vsyncadd (%p3267_p2), [#allocation7], 4294948864  ;;  %215 = vst [vmem:[#allocation2 + $0x8] sm:$0x1] %v2814_v0  ;;  %v541_v3 = vld [vmem:[#allocation6 + $0x280] sm:$0xff]  ;;  %v2274_v4 = vpack.c.bf16 %v260_v2, %v259_v1  ;;  %v542_v5 = vld [vmem:[#allocation6 + $0x288] sm:$0xff]  ;;  %s3200_s27 = scalar_lea.hbm %s3253_s3, %s1661_s4 }
  0x57   : > { %213 = vst [vmem:[#allocation2 + $0x80] sm:$0xff] %v2814_v0  ;;  %214 = vst [vmem:[#allocation2 + $0x88] sm:$0x1] %v2814_v0  ;;  %v262_v7 = vld [vmem:[#allocation6 + $0x218] sm:$0xff]  ;;  %v2338_v8 = vpack.c.bf16 %v542_v5, %v541_v3  ;;  %v543_v10 = vld [vmem:[#allocation6 + $0x290] sm:$0xff]  ;;  %s3137_s9 = scalar_lea.vmem [#allocation8], %s1637_s8 }
  0x58   : > { %216 = vst [vmem:[#allocation2 + $0x18] sm:$0x1] %v2814_v0  ;;  %217 = vst [vmem:[#allocation2 + $0x28] sm:$0x1] %v2814_v0  ;;  %v2278_v9 = vpack.c.bf16 %v262_v7, %v261_v6  ;;  %v544_v11 = vld [vmem:[#allocation6 + $0x298] sm:$0xff]  ;;  %v263_v12 = vld [vmem:[#allocation6 + $0x220] sm:$0xff]  ;;  %2275 = vmatprep.subr.bf16.mxu0 %v2274_v4 }
  0x59   : > { %218 = vst [vmem:[#allocation2 + $0x38] sm:$0x1] %v2814_v0  ;;  %219 = vst [vmem:[#allocation2 + $0x48] sm:$0x1] %v2814_v0  ;;  %v2342_v13 = vpack.c.bf16 %v544_v11, %v543_v10  ;;  %v264_v14 = vld [vmem:[#allocation6 + $0x228] sm:$0xff]  ;;  %v545_v15 = vld [vmem:[#allocation6 + $0x2a0] sm:$0xff]  ;;  %2339 = vmatprep.subr.bf16.mxu1 %v2338_v8  ;;  %2277 = vmatpush3.bf16.msra.mxu0 %v2274_v4 }
  0x5a   : > { %220 = vst [vmem:[#allocation2 + $0x58] sm:$0x1] %v2814_v0  ;;  %221 = vst [vmem:[#allocation2 + $0x68] sm:$0x1] %v2814_v0  ;;  %v546_v16 = vld [vmem:[#allocation6 + $0x2a8] sm:$0xff]  ;;  %2341 = vmatpush3.bf16.msra.mxu1 %v2338_v8  ;;  %2279 = vmatprep.subr.bf16.mxu0 %v2278_v9  ;;  %v2282_v17 = vpack.c.bf16 %v264_v14, %v263_v12  ;;  %v265_v19 = vld [vmem:[#allocation6 + $0x230] sm:$0xff] }
  0x5b   : > { %222 = vst [vmem:[#allocation2 + $0x78] sm:$0x1] %v2814_v0  ;;  %223 = vst [vmem:[#allocation2 + $0x88] sm:$0x1] %v2814_v0  ;;  %2343 = vmatprep.subr.bf16.mxu1 %v2342_v13  ;;  %v2346_v18 = vpack.c.bf16 %v546_v16, %v545_v15  ;;  %v266_v20 = vld [vmem:[#allocation6 + $0x238] sm:$0xff]  ;;  %v547_v21 = vld [vmem:[#allocation6 + $0x2b0] sm:$0xff] }
  0x5c   : > { %v548_v22 = vld [vmem:[#allocation6 + $0x2b8] sm:$0xff]  ;;  %v2286_v23 = vpack.c.bf16 %v266_v20, %v265_v19  ;;  %v267_v25 = vld [vmem:[#allocation6 + $0x240] sm:$0xff]  ;;  %v268_v26 = vld [vmem:[#allocation6 + $0x248] sm:$0xff]  ;;  %s1544_s25 = sshll.u32 %s3137_s9, 4  ;;  %s1531_s16 = scalar_lea.sflag [#allocation5], %s2983_s6  ;;  %s3202_s25 = int_to_ptr.vmem [resolvable:$true] %s1544_s25 }
  0x5d   : > { %2281 = vmatpush3.bf16.msra.mxu0 %v2278_v9  ;;  %v2350_v24 = vpack.c.bf16 %v548_v22, %v547_v21  ;;  %v3009_v27 = vld [vmem:[%s2987_s11] sm:$0xff]  ;;  %v550_v29 = vld [vmem:[#allocation6 + $0x2c8] sm:$0xff]  ;;  %v2290_v31 = vpack.c.bf16 %v268_v26, %v267_v25  ;;  %v269_v33 = vld [vmem:[#allocation6 + $0x250] sm:$0xff]  ;;  %s2738_s28 = scalar_lea.vmem %s3202_s25, 2048  ;;  %s2815_s23 = smov [#allocation8]  }
  0x5e   : > { %2345 = vmatpush3.bf16.msra.mxu1 %v2342_v13  ;;  %2283 = vmatprep.subr.bf16.mxu0 %v2282_v17  ;;  %v549_v28 = vld [vmem:[#allocation6 + $0x2c0] sm:$0xff]  ;;  %224 = vst [vmem:[#allocation2] sm:$0xff] %v3009_v27  ;;  %v3014_v30 = vld [vmem:[%s2987_s11 + $0x8] sm:$0xff]  ;;  %v270_v34 = vld [vmem:[#allocation6 + $0x258] sm:$0xff]  ;;  %p2739_p4 = scmp.ne.s32.totalorder %s3202_s25, %s2738_s28  ;;  %s2742_s29 = sshll.u32 %s2815_s23, 4  ;;  %s2743_s29 = int_to_ptr.vmem [resolvable:$false] %s2742_s29 }
  0x5f   : > { %2347 = vmatprep.subr.bf16.mxu1 %v2346_v18  ;;  %1910 = vmatprep.mubr.f32.mxu0 %v3009_v27  ;;  %225 = vst [vmem:[#allocation2 + $0x10] sm:$0xff] %v3014_v30  ;;  %v2354_v32 = vpack.c.bf16 %v550_v29, %v549_v28  ;;  %v551_v35 = vld [vmem:[#allocation6 + $0x2d0] sm:$0xff]  ;;  %v552_v36 = vld [vmem:[#allocation6 + $0x2d8] sm:$0xff]  ;;  %v2294_v37 = vpack.c.bf16 %v270_v34, %v269_v33  ;;  %v271_v38 = vld [vmem:[#allocation6 + $0x260] sm:$0xff]  ;;  %s2744_s30 = scalar_lea.vmem %s2743_s29, 4096  ;;  %p2745_p10 = scmp.lt.s32.totalorder %s3202_s25, %s2743_s29 }
  0x60   : > { %1998 = vmatprep.mubr.f32.mxu1 %v3009_v27  ;;  %v2358_v39 = vpack.c.bf16 %v552_v36, %v551_v35  ;;  %v272_v40 = vld [vmem:[#allocation6 + $0x268] sm:$0xff]  ;;  %v3019_v41 = vld [vmem:[%s2987_s11 + $0x10] sm:$0xff]  ;;  %v3022_v42 = vld [vmem:[%s2987_s11 + $0x18] sm:$0xff]  ;;  %p2740_p6 = pnand %p2739_p4, %p2932_p12  ;;  %p2746_p13 = scmp.lt.s32.totalorder %s2744_s30, %s2738_s28 }
  0x61   : > { %2285 = vmatpush3.bf16.msra.mxu0 %v2282_v17  ;;  %v553_v43 = vld [vmem:[#allocation6 + $0x2e0] sm:$0xff]  ;;  %v554_v44 = vld [vmem:[#allocation6 + $0x2e8] sm:$0xff]  ;;  %226 = vst [vmem:[#allocation2 + $0x20] sm:$0xff] %v3019_v41  ;;  %227 = vst [vmem:[#allocation2 + $0x30] sm:$0xff] %v3022_v42  ;;  %v2298_v47 = vpack.c.bf16 %v272_v40, %v271_v38 }
  0x62   : > { %2349 = vmatpush3.bf16.msra.mxu1 %v2346_v18  ;;  %2287 = vmatprep.subr.bf16.mxu0 %v2286_v23  ;;  %v3027_v45 = vld [vmem:[%s2987_s11 + $0x20] sm:$0xff]  ;;  %v3030_v46 = vld [vmem:[%s2987_s11 + $0x28] sm:$0xff]  ;;  %v273_v48 = vld [vmem:[#allocation6 + $0x270] sm:$0xff]  ;;  %v2362_v49 = vpack.c.bf16 %v554_v44, %v553_v43  ;;  %p2741_p8 = pneg %p2740_p6  ;;  %p2747_p3 = por %p2746_p13, %p2745_p10 }
  0x63   : > { %2351 = vmatprep.subr.bf16.mxu1 %v2350_v24  ;;  %228 = vst [vmem:[#allocation2 + $0x40] sm:$0xff] %v3027_v45  ;;  %229 = vst [vmem:[#allocation2 + $0x50] sm:$0xff] %v3030_v46  ;;  %v274_v50 = vld [vmem:[#allocation6 + $0x278] sm:$0xff]  ;;  %v3035_v51 = vld [vmem:[%s2987_s11 + $0x30] sm:$0xff] }
  0x64   : > { %v3038_v52 = vld [vmem:[%s2987_s11 + $0x38] sm:$0xff]  ;;  %v555_v53 = vld [vmem:[#allocation6 + $0x2f0] sm:$0xff]  ;;  %230 = vst [vmem:[#allocation2 + $0x60] sm:$0xff] %v3035_v51  ;;  %v2302_v55 = vpack.c.bf16 %v274_v50, %v273_v48  ;;  %v419_v57 = vld [vmem:[#allocation6 + $0x180] sm:$0xff]  ;;  %p2748_p7 = pnand %p2747_p3, %p2741_p8 }
  0x65   : > { %2289 = vmatpush3.bf16.msra.mxu0 %v2286_v23  ;;  %v556_v54 = vld [vmem:[#allocation6 + $0x2f8] sm:$0xff]  ;;  %231 = vst [vmem:[#allocation2 + $0x70] sm:$0xff] %v3038_v52  ;;  %v420_v58 = vld [vmem:[#allocation6 + $0x188] sm:$0xff]  ;;  %v987_v59 = vld [vmem:[#allocation6] sm:$0xff] }
  0x66   : > { %2353 = vmatpush3.bf16.msra.mxu1 %v2350_v24  ;;  %2291 = vmatprep.subr.bf16.mxu0 %v2290_v31  ;;  %v2366_v56 = vpack.c.bf16 %v556_v54, %v555_v53  ;;  %v988_v60 = vld [vmem:[#allocation6 + $0x8] sm:$0xff]  ;;  %v2306_v61 = vpack.c.bf16 %v420_v58, %v419_v57  ;;  %v421_v63 = vld [vmem:[#allocation6 + $0x190] sm:$0xff]  ;;  %v422_v1 = vld [vmem:[#allocation6 + $0x198] sm:$0xff] }
  0x67   : > { %2355 = vmatprep.subr.bf16.mxu1 %v2354_v32  ;;  %v2434_v62 = vpack.c.bf16 %v988_v60, %v987_v59  ;;  %v989_v2 = vld [vmem:[#allocation6 + $0x10] sm:$0xff]  ;;  %v990_v3 = vld [vmem:[#allocation6 + $0x18] sm:$0xff]  ;;  %v2310_v4 = vpack.c.bf16 %v422_v1, %v421_v63  ;;  %v423_v6 = vld [vmem:[#allocation6 + $0x1a0] sm:$0xff] }
  0x68   : > { %v2438_v5 = vpack.c.bf16 %v990_v3, %v989_v2  ;;  %v424_v7 = vld [vmem:[#allocation6 + $0x1a8] sm:$0xff]  ;;  %v991_v8 = vld [vmem:[#allocation6 + $0x20] sm:$0xff]  ;;  %v425_v12 = vld [vmem:[#allocation6 + $0x1b0] sm:$0xff] }
  0x69   : > { %2293 = vmatpush3.bf16.msra.mxu0 %v2290_v31  ;;  %v992_v9 = vld [vmem:[#allocation6 + $0x28] sm:$0xff]  ;;  %v2314_v10 = vpack.c.bf16 %v424_v7, %v423_v6  ;;  %v426_v13 = vld [vmem:[#allocation6 + $0x1b8] sm:$0xff]  ;;  %v993_v14 = vld [vmem:[#allocation6 + $0x30] sm:$0xff] }
  0x6a   : > { %2357 = vmatpush3.bf16.msra.mxu1 %v2354_v32  ;;  %2295 = vmatprep.subr.bf16.mxu0 %v2294_v37  ;;  %v2442_v11 = vpack.c.bf16 %v992_v9, %v991_v8  ;;  %v994_v15 = vld [vmem:[#allocation6 + $0x38] sm:$0xff]  ;;  %v2318_v16 = vpack.c.bf16 %v426_v13, %v425_v12  ;;  %v427_v18 = vld [vmem:[#allocation6 + $0x1c0] sm:$0xff]  ;;  %v428_v19 = vld [vmem:[#allocation6 + $0x1c8] sm:$0xff] }
  0x6b   : > { %2359 = vmatprep.subr.bf16.mxu1 %v2358_v39  ;;  %v2446_v17 = vpack.c.bf16 %v994_v15, %v993_v14  ;;  %v995_v20 = vld [vmem:[#allocation6 + $0x40] sm:$0xff]  ;;  %v996_v21 = vld [vmem:[#allocation6 + $0x48] sm:$0xff]  ;;  %v2322_v22 = vpack.c.bf16 %v428_v19, %v427_v18  ;;  %v429_v24 = vld [vmem:[#allocation6 + $0x1d0] sm:$0xff] }
  0x6c   : > { %v2450_v23 = vpack.c.bf16 %v996_v21, %v995_v20  ;;  %v430_v25 = vld [vmem:[#allocation6 + $0x1d8] sm:$0xff]  ;;  %v997_v26 = vld [vmem:[#allocation6 + $0x50] sm:$0xff]  ;;  %v3058_v31 = vld [vmem:[#allocation2 + $0x11] sm:$0xff] }
  0x6d   : > { %2297 = vmatpush3.bf16.msra.mxu0 %v2294_v37  ;;  %v998_v28 = vld [vmem:[#allocation6 + $0x58] sm:$0xff]  ;;  %v2326_v32 = vpack.c.bf16 %v430_v25, %v429_v24  ;;  %v431_v34 = vld [vmem:[#allocation6 + $0x1e0] sm:$0xff]  ;;  %v432_v35 = vld [vmem:[#allocation6 + $0x1e8] sm:$0xff] }
  0x6e   : > { %2361 = vmatpush3.bf16.msra.mxu1 %v2358_v39  ;;  %2299 = vmatprep.subr.bf16.mxu0 %v2298_v47  ;;  %v3055_v29 = vld [vmem:[#allocation2 + $0x1] sm:$0xff]  ;;  %v2454_v33 = vpack.c.bf16 %v998_v28, %v997_v26  ;;  %v999_v36 = vld [vmem:[#allocation6 + $0x60] sm:$0xff]  ;;  %v1000_v37 = vld [vmem:[#allocation6 + $0x68] sm:$0xff]  ;;  %v2330_v38 = vpack.c.bf16 %v432_v35, %v431_v34 }
  0x6f   : > { %2363 = vmatprep.subr.bf16.mxu1 %v2362_v49  ;;  %v2458_v39 = vpack.c.bf16 %v1000_v37, %v999_v36  ;;  %v433_v40 = vld [vmem:[#allocation6 + $0x1f0] sm:$0xff]  ;;  %v434_v43 = vld [vmem:[#allocation6 + $0x1f8] sm:$0xff]  ;;  %v703_v50 = vld [vmem:[#allocation6 + $0x80] sm:$0xff] }
  0x70   : > { %v1001_v44 = vld [vmem:[#allocation6 + $0x70] sm:$0xff]  ;;  %v2334_v48 = vpack.c.bf16 %v434_v43, %v433_v40  ;;  %v704_v53 = vld [vmem:[#allocation6 + $0x88] sm:$0xff]  ;;  %v1109_v54 = vld [vmem:[#allocation6 + $0x100] sm:$0xff] }
  0x71   : > { %2301 = vmatpush3.bf16.msra.mxu0 %v2298_v47  ;;  %v1002_v47 = vld [vmem:[#allocation6 + $0x78] sm:$0xff]  ;;  %v705_v58 = vld [vmem:[#allocation6 + $0x90] sm:$0xff]  ;;  %v707_v2 = vld [vmem:[#allocation6 + $0xa0] sm:$0xff] }
  0x72   : > { %2365 = vmatpush3.bf16.msra.mxu1 %v2362_v49  ;;  %2303 = vmatprep.subr.bf16.mxu0 %v2302_v55  ;;  %v2462_v49 = vpack.c.bf16 %v1002_v47, %v1001_v44  ;;  %v706_v59 = vld [vmem:[#allocation6 + $0x98] sm:$0xff]  ;;  %v1111_v60 = vld [vmem:[#allocation6 + $0x110] sm:$0xff]  ;;  %v708_v3 = vld [vmem:[#allocation6 + $0xa8] sm:$0xff] }
  0x73   : > { %2367 = vmatprep.subr.bf16.mxu1 %v2366_v56  ;;  %v2374_v63 = vpack.c.bf16 %v706_v59, %v705_v58  ;;  %v3066_v6 = vld [vmem:[#allocation2 + $0x31] sm:$0xff]  ;;  %v3069_v7 = vld [vmem:[#allocation2 + $0x41] sm:$0xff]  ;;  %v2378_v8 = vpack.c.bf16 %v708_v3, %v707_v2 }
  0x74   : > { %v1115_v12 = vld [vmem:[#allocation6 + $0x130] sm:$0xff]  ;;  %v1116_v13 = vld [vmem:[#allocation6 + $0x138] sm:$0xff]  ;;  %v3074_v14 = vld [vmem:[#allocation2 + $0x51] sm:$0xff] }
  0x75   : > { %2305 = vmatpush3.bf16.msra.mxu0 %v2302_v55  ;;  %v1110_v55 = vld [vmem:[#allocation6 + $0x108] sm:$0xff]  ;;  %v3076_v15 = vld [vmem:[#allocation2 + $0x61] sm:$0xff]  ;;  %v711_v18 = vld [vmem:[#allocation6 + $0xc0] sm:$0xff] }
  0x76   : > { %2369 = vmatpush3.bf16.msra.mxu1 %v2366_v56  ;;  %2307 = vmatprep.subr.bf16.mxu0 %v2306_v61  ;;  %v2370_v56 = vpack.c.bf16 %v704_v53, %v703_v50  ;;  %v2466_v57 = vpack.c.bf16 %v1110_v55, %v1109_v54  ;;  %v712_v19 = vld [vmem:[#allocation6 + $0xc8] sm:$0xff]  ;;  %v1117_v20 = vld [vmem:[#allocation6 + $0x140] sm:$0xff]  ;;  %v713_v25 = vld [vmem:[#allocation6 + $0xd0] sm:$0xff] }
  0x77   : > { %2435 = vmatprep.subr.bf16.mxu1 %v2434_v62  ;;  %v1118_v21 = vld [vmem:[#allocation6 + $0x148] sm:$0xff]  ;;  %v714_v26 = vld [vmem:[#allocation6 + $0xd8] sm:$0xff]  ;;  %v1119_v28 = vld [vmem:[#allocation6 + $0x150] sm:$0xff] }
  0x78   : > { %1911 = vmatmul.mubr.f32.vlgmr.msra.gmra.mrb[0].mxu0 %v3014_v30  ;;  %v2482_v24 = vpack.c.bf16 %v1118_v21, %v1117_v20  ;;  %v2390_v34 = vpack.c.bf16 %v714_v26, %v713_v25  ;;  %v715_v36 = vld [vmem:[#allocation6 + $0xe0] sm:$0xff]  ;;  %v716_v37 = vld [vmem:[#allocation6 + $0xe8] sm:$0xff]  ;;  %v717_v44 = vld [vmem:[#allocation6 + $0xf0] sm:$0xff] }
  0x79   : > { %2309 = vmatpush3.bf16.msra.mxu0 %v2306_v61  ;;  %1999 = vmatmul.mubr.f32.vlgmr.msra.gmra.mrb[0].mxu1 %v3014_v30  ;;  %v1112_v61 = vld [vmem:[#allocation6 + $0x118] sm:$0xff]  ;;  %v2394_v40 = vpack.c.bf16 %v716_v37, %v715_v36  ;;  %v825_v54 = vld [vmem:[#allocation6 + $0x380] sm:$0xff]  ;;  %v826_v55 = vld [vmem:[#allocation6 + $0x388] sm:$0xff] }
  0x7a   : > { %2437 = vmatpush3.bf16.msra.mxu1 %v2434_v62  ;;  %2311 = vmatprep.subr.bf16.mxu0 %v2310_v4  ;;  %v3062_v62 = vld [vmem:[#allocation2 + $0x21] sm:$0xff]  ;;  %v2470_v1 = vpack.c.bf16 %v1112_v61, %v1111_v60  ;;  %v2402_v58 = vpack.c.bf16 %v826_v55, %v825_v54  ;;  %v833_v20 = vld [vmem:[#allocation6 + $0x3c0] sm:$0xff]  ;;  %v834_v21 = vld [vmem:[#allocation6 + $0x3c8] sm:$0xff] }
  0x7b   : > { %2439 = vmatprep.subr.bf16.mxu1 %v2438_v5  ;;  %1913 = vmatprep.mubr.f32.mxu0 %v3019_v41  ;;  %v718_v47 = vld [vmem:[#allocation6 + $0xf8] sm:$0xff]  ;;  %v827_v60 = vld [vmem:[#allocation6 + $0x390] sm:$0xff]  ;;  %v2418_v25 = vpack.c.bf16 %v834_v21, %v833_v20  ;;  %v837_v37 = vld [vmem:[#allocation6 + $0x3e0] sm:$0xff] }
  0x7c   : > { %1914 = vmatmul.mubr.f32.gmra.mrb[2].mxu0 %v3022_v42  ;;  %2001 = vmatprep.mubr.f32.mxu1 %v3019_v41  ;;  %v2398_v50 = vpack.c.bf16 %v718_v47, %v717_v44  ;;  %v828_v61 = vld [vmem:[#allocation6 + $0x398] sm:$0xff]  ;;  %v1369_v54 = vld [vmem:[#allocation6 + $0x400] sm:$0xff]  ;;  %v1370_v55 = vld [vmem:[#allocation6 + $0x408] sm:$0xff] }
  0x7d   : > { %2313 = vmatpush3.bf16.msra.mxu0 %v2310_v4  ;;  %2002 = vmatmul.mubr.f32.gmra.mrb[2].mxu1 %v3022_v42  ;;  %v1113_v4 = vld [vmem:[#allocation6 + $0x120] sm:$0xff]  ;;  %v2406_v2 = vpack.c.bf16 %v828_v61, %v827_v60  ;;  %v840_v47 = vld [vmem:[#allocation6 + $0x3f8] sm:$0xff]  ;;  %v1374_v60 = vld [vmem:[#allocation6 + $0x428] sm:$0xff] }
  0x7e   : > { %2441 = vmatpush3.bf16.msra.mxu1 %v2438_v5  ;;  %2315 = vmatprep.subr.bf16.mxu0 %v2314_v10  ;;  %v1114_v5 = vld [vmem:[#allocation6 + $0x128] sm:$0xff] }
  0x7f   : > { %2443 = vmatprep.subr.bf16.mxu1 %v2442_v11  ;;  %1916 = vmatprep.mubr.f32.mxu0 %v3027_v45  ;;  %v2474_v9 = vpack.c.bf16 %v1114_v5, %v1113_v4  ;;  %v829_v4 = vld [vmem:[#allocation6 + $0x3a0] sm:$0xff]  ;;  %v830_v5 = vld [vmem:[#allocation6 + $0x3a8] sm:$0xff] }
  0x80   : > { %1917 = vmatmul.mubr.f32.gmra.mrb[4].mxu0 %v3030_v46  ;;  %2004 = vmatprep.mubr.f32.mxu1 %v3027_v45 }
  0x81   : > { %2317 = vmatpush3.bf16.msra.mxu0 %v2314_v10  ;;  %2005 = vmatmul.mubr.f32.gmra.mrb[4].mxu1 %v3030_v46  ;;  %v709_v10 = vld [vmem:[#allocation6 + $0xb0] sm:$0xff] }
  0x82   : > { %2445 = vmatpush3.bf16.msra.mxu1 %v2442_v11  ;;  %2319 = vmatprep.subr.bf16.mxu0 %v2318_v16  ;;  %v710_v11 = vld [vmem:[#allocation6 + $0xb8] sm:$0xff] }
  0x83   : > { %2447 = vmatprep.subr.bf16.mxu1 %v2446_v17  ;;  %1919 = vmatprep.mubr.f32.mxu0 %v3035_v51 }
  0x84   : > { %1920 = vmatmul.mubr.f32.gmra.mrb[6].mxu0 %v3038_v52  ;;  %2007 = vmatprep.mubr.f32.mxu1 %v3035_v51 }
  0x85   : > { %2321 = vmatpush3.bf16.msra.mxu0 %v2318_v16  ;;  %2008 = vmatmul.mubr.f32.gmra.mrb[6].mxu1 %v3038_v52  ;;  %v2382_v16 = vpack.c.bf16 %v710_v11, %v709_v10  ;;  %v2410_v10 = vpack.c.bf16 %v830_v5, %v829_v4  ;;  %v1380_v4 = vld [vmem:[#allocation6 + $0x458] sm:$0xff]  ;;  %v1381_v5 = vld [vmem:[#allocation6 + $0x460] sm:$0xff] }
  0x86   : > { %2449 = vmatpush3.bf16.msra.mxu1 %v2446_v17  ;;  %2323 = vmatprep.subr.bf16.mxu0 %v2322_v22  ;;  %v2478_v17 = vpack.c.bf16 %v1116_v13, %v1115_v12  ;;  %v831_v12 = vld [vmem:[#allocation6 + $0x3b0] sm:$0xff]  ;;  %v832_v13 = vld [vmem:[#allocation6 + $0x3b8] sm:$0xff] }
  0x87   : > { %2451 = vmatprep.subr.bf16.mxu1 %v2450_v23  ;;  %1954 = vmatprep.mubr.f32.mxu0 %v3055_v29 }
  0x88   : > { %2130 = vmatprep.mubr.f32.mxu1 %v3058_v31 }
  0x89   : > { %2325 = vmatpush3.bf16.msra.mxu0 %v2322_v22  ;;  %v3082_v22 = vld [vmem:[#allocation2 + $0x71] sm:$0xff] }
  0x8a   : > { %2453 = vmatpush3.bf16.msra.mxu1 %v2450_v23  ;;  %2327 = vmatprep.subr.bf16.mxu0 %v2326_v32  ;;  %v2386_v23 = vpack.c.bf16 %v712_v19, %v711_v18  ;;  %v2414_v18 = vpack.c.bf16 %v832_v13, %v831_v12 }
  0x8b   : > { %2455 = vmatprep.subr.bf16.mxu1 %v2454_v33 }
  0x8d   : > { %2329 = vmatpush3.bf16.msra.mxu0 %v2326_v32  ;;  %v1120_v32 = vld [vmem:[#allocation6 + $0x158] sm:$0xff] }
  0x8e   : > { %2457 = vmatpush3.bf16.msra.mxu1 %v2454_v33  ;;  %2331 = vmatprep.subr.bf16.mxu0 %v2330_v38  ;;  %v256_v33 = vld [vmem:[#allocation2 + $0x81] sm:$0xff]  ;;  %v2486_v35 = vpack.c.bf16 %v1120_v32, %v1119_v28 }
  0x8f   : > { %2459 = vmatprep.subr.bf16.mxu1 %v2458_v39  ;;  %v835_v28 = vld [vmem:[#allocation6 + $0x3d0] sm:$0xff]  ;;  %v836_v32 = vld [vmem:[#allocation6 + $0x3d8] sm:$0xff] }
  0x91   : > { %2333 = vmatpush3.bf16.msra.mxu0 %v2330_v38  ;;  %v1121_v38 = vld [vmem:[#allocation6 + $0x160] sm:$0xff] }
  0x92   : > { %2461 = vmatpush3.bf16.msra.mxu1 %v2458_v39  ;;  %2335 = vmatprep.subr.bf16.mxu0 %v2334_v48  ;;  %v1122_v39 = vld [vmem:[#allocation6 + $0x168] sm:$0xff] }
  0x93   : > { %2463 = vmatprep.subr.bf16.mxu1 %v2462_v49  ;;  %v2490_v43 = vpack.c.bf16 %v1122_v39, %v1121_v38  ;;  %v838_v38 = vld [vmem:[#allocation6 + $0x3e8] sm:$0xff]  ;;  %v1251_v39 = vld [vmem:[#allocation6 + $0x360] sm:$0xff] }
  0x95   : > { %2337 = vmatpush3.bf16.msra.mxu0 %v2334_v48  ;;  %v1123_v48 = vld [vmem:[#allocation6 + $0x170] sm:$0xff] }
  0x96   : > { %2465 = vmatpush3.bf16.msra.mxu1 %v2462_v49  ;;  %2371 = vmatprep.subr.bf16.mxu0 %v2370_v56  ;;  %v1124_v49 = vld [vmem:[#allocation6 + $0x178] sm:$0xff] }
  0x97   : > { %2467 = vmatprep.subr.bf16.mxu1 %v2466_v57  ;;  %v2494_v53 = vpack.c.bf16 %v1124_v49, %v1123_v48  ;;  %v1253_v48 = vld [vmem:[#allocation6 + $0x370] sm:$0xff]  ;;  %v1254_v49 = vld [vmem:[#allocation6 + $0x378] sm:$0xff] }
  0x98   : > { %1955 = vmatmul.mubr.f32.vlgmr.msra.gmra.mrb[8].mxu0 %v3058_v31 }
  0x99   : > { %2373 = vmatpush3.bf16.msra.mxu0 %v2370_v56  ;;  %2131 = vmatmul.mubr.f32.vlgmr.msra.gmra.mrb[8].mxu1 %v3062_v62  ;;  %v1239_v56 = vld [vmem:[#allocation6 + $0x300] sm:$0xff] }
  0x9a   : > { %2469 = vmatpush3.bf16.msra.mxu1 %v2466_v57  ;;  %1957 = vmatprep.mubr.f32.mxu0 %v3062_v62  ;;  %v1240_v57 = vld [vmem:[#allocation6 + $0x308] sm:$0xff] }
  0x9b   : > { %2375 = vmatprep.subr.bf16.mxu0 %v2374_v63  ;;  %2471 = vmatprep.subr.bf16.mxu1 %v2470_v1  ;;  %v2498_v59 = vpack.c.bf16 %v1240_v57, %v1239_v56  ;;  %v1371_v56 = vld [vmem:[#allocation6 + $0x410] sm:$0xff]  ;;  %v1372_v57 = vld [vmem:[#allocation6 + $0x418] sm:$0xff] }
  0x9c   : > { %1958 = vmatmul.mubr.f32.gmra.mrb[10].mxu0 %v3066_v6  ;;  %2133 = vmatprep.mubr.f32.mxu1 %v3066_v6 }
  0x9d   : > { %2377 = vmatpush3.bf16.msra.mxu0 %v2374_v63  ;;  %1960 = vmatprep.mubr.f32.mxu0 %v3069_v7  ;;  %v1241_v63 = vld [vmem:[#allocation6 + $0x310] sm:$0xff] }
  0x9e   : > { %2473 = vmatpush3.bf16.msra.mxu1 %v2470_v1  ;;  %2379 = vmatprep.subr.bf16.mxu0 %v2378_v8  ;;  %v1242_v1 = vld [vmem:[#allocation6 + $0x318] sm:$0xff] }
  0x9f   : > { %2475 = vmatprep.subr.bf16.mxu1 %v2474_v9  ;;  %2134 = vmatmul.mubr.f32.gmra.mrb[10].mxu1 %v3069_v7  ;;  %v2502_v3 = vpack.c.bf16 %v1242_v1, %v1241_v63  ;;  %v1375_v63 = vld [vmem:[#allocation6 + $0x430] sm:$0xff]  ;;  %v1376_v1 = vld [vmem:[#allocation6 + $0x438] sm:$0xff] }
  0xa0   : > { %1961 = vmatmul.mubr.f32.gmra.mrb[12].mxu0 %v3074_v14  ;;  %2136 = vmatprep.mubr.f32.mxu1 %v3074_v14 }
  0xa1   : > { %2381 = vmatpush3.bf16.msra.mxu0 %v2378_v8  ;;  %1963 = vmatprep.mubr.f32.mxu0 %v3076_v15  ;;  %v1243_v8 = vld [vmem:[#allocation6 + $0x320] sm:$0xff] }
  0xa2   : > { %2477 = vmatpush3.bf16.msra.mxu1 %v2474_v9  ;;  %2383 = vmatprep.subr.bf16.mxu0 %v2382_v16  ;;  %v1244_v9 = vld [vmem:[#allocation6 + $0x328] sm:$0xff] }
  0xa3   : > { %2479 = vmatprep.subr.bf16.mxu1 %v2478_v17  ;;  %2137 = vmatmul.mubr.f32.gmra.mrb[12].mxu1 %v3076_v15  ;;  %v2506_v11 = vpack.c.bf16 %v1244_v9, %v1243_v8  ;;  %v1382_v8 = vld [vmem:[#allocation6 + $0x468] sm:$0xff]  ;;  %v1383_v9 = vld [vmem:[#allocation6 + $0x470] sm:$0xff] }
  0xa4   : > { %1964 = vmatmul.mubr.f32.gmra.mrb[14].mxu0 %v3082_v22  ;;  %2139 = vmatprep.mubr.f32.mxu1 %v3082_v22 }
  0xa5   : > { %2385 = vmatpush3.bf16.msra.mxu0 %v2382_v16  ;;  %2042 = vmatprep.mubr.f32.mxu0 %v3014_v30  ;;  %v1245_v16 = vld [vmem:[#allocation6 + $0x330] sm:$0xff] }
  0xa6   : > { %2481 = vmatpush3.bf16.msra.mxu1 %v2478_v17  ;;  %2387 = vmatprep.subr.bf16.mxu0 %v2386_v23  ;;  %v1246_v17 = vld [vmem:[#allocation6 + $0x338] sm:$0xff] }
  0xa7   : > { %2483 = vmatprep.subr.bf16.mxu1 %v2482_v24  ;;  %2140 = vmatmul.mubr.f32.gmra.mrb[14].mxu1 %v256_v33  ;;  %v2510_v19 = vpack.c.bf16 %v1246_v17, %v1245_v16  ;;  %v1249_v33 = vld [vmem:[#allocation6 + $0x350] sm:$0xff] }
  0xa8   : > { %2174 = vmatprep.mubr.f32.mxu1 %v3014_v30 }
  0xa9   : > { %2389 = vmatpush3.bf16.msra.mxu0 %v2386_v23  ;;  %v1247_v23 = vld [vmem:[#allocation6 + $0x340] sm:$0xff] }
  0xaa   : > { %2485 = vmatpush3.bf16.msra.mxu1 %v2482_v24  ;;  %2391 = vmatprep.subr.bf16.mxu0 %v2390_v34  ;;  %v1248_v24 = vld [vmem:[#allocation6 + $0x348] sm:$0xff] }
  0xab   : > { %2487 = vmatprep.subr.bf16.mxu1 %v2486_v35  ;;  %v2514_v26 = vpack.c.bf16 %v1248_v24, %v1247_v23 }
  0xad   : > { %2393 = vmatpush3.bf16.msra.mxu0 %v2390_v34  ;;  %v1250_v34 = vld [vmem:[#allocation6 + $0x358] sm:$0xff] }
  0xae   : > { %2489 = vmatpush3.bf16.msra.mxu1 %v2486_v35  ;;  %2395 = vmatprep.subr.bf16.mxu0 %v2394_v40  ;;  %v2422_v35 = vpack.c.bf16 %v836_v32, %v835_v28  ;;  %v2518_v36 = vpack.c.bf16 %v1250_v34, %v1249_v33 }
  0xaf   : > { %2491 = vmatprep.subr.bf16.mxu1 %v2490_v43 }
  0xb1   : > { %2397 = vmatpush3.bf16.msra.mxu0 %v2394_v40  ;;  %v1252_v40 = vld [vmem:[#allocation6 + $0x368] sm:$0xff] }
  0xb2   : > { %2493 = vmatpush3.bf16.msra.mxu1 %v2490_v43  ;;  %2399 = vmatprep.subr.bf16.mxu0 %v2398_v50  ;;  %v2426_v43 = vpack.c.bf16 %v838_v38, %v837_v37  ;;  %v2522_v44 = vpack.c.bf16 %v1252_v40, %v1251_v39 }
  0xb3   : > { %2495 = vmatprep.subr.bf16.mxu1 %v2494_v53 }
  0xb5   : > { %2401 = vmatpush3.bf16.msra.mxu0 %v2398_v50 }
  0xb6   : > { %2497 = vmatpush3.bf16.msra.mxu1 %v2494_v53  ;;  %2403 = vmatprep.subr.bf16.mxu0 %v2402_v58  ;;  %v2526_v53 = vpack.c.bf16 %v1254_v49, %v1253_v48 }
  0xb7   : > { %2499 = vmatprep.subr.bf16.mxu1 %v2498_v59 }
  0xb8   : > { %2043 = vmatmul.mubr.f32.vlgmr.msra.gmra.mrb[16].mxu0 %v3019_v41 }
  0xb9   : > { %2405 = vmatpush3.bf16.msra.mxu0 %v2402_v58  ;;  %2175 = vmatmul.mubr.f32.vlgmr.msra.gmra.mrb[8].mxu1 %v3019_v41  ;;  %v2534_v58 = vpack.c.bf16 %v1372_v57, %v1371_v56 }
  0xba   : > { %2501 = vmatpush3.bf16.msra.mxu1 %v2498_v59  ;;  %2407 = vmatprep.subr.bf16.mxu0 %v2406_v2  ;;  %v1373_v59 = vld [vmem:[#allocation6 + $0x420] sm:$0xff] }
  0xbb   : > { %2503 = vmatprep.subr.bf16.mxu1 %v2502_v3  ;;  %2045 = vmatprep.mubr.f32.mxu0 %v3022_v42  ;;  %v2538_v61 = vpack.c.bf16 %v1374_v60, %v1373_v59 }
  0xbc   : > { %2177 = vmatprep.mubr.f32.mxu1 %v3022_v42  ;;  %2046 = vmatmul.mubr.f32.gmra.mrb[18].mxu0 %v3027_v45 }
  0xbd   : > { %2409 = vmatpush3.bf16.msra.mxu0 %v2406_v2  ;;  %2178 = vmatmul.mubr.f32.gmra.mrb[10].mxu1 %v3027_v45  ;;  %v1377_v2 = vld [vmem:[#allocation6 + $0x440] sm:$0xff] }
  0xbe   : > { %2505 = vmatpush3.bf16.msra.mxu1 %v2502_v3  ;;  %2411 = vmatprep.subr.bf16.mxu0 %v2410_v10  ;;  %v1378_v3 = vld [vmem:[#allocation6 + $0x448] sm:$0xff] }
  0xbf   : > { %2507 = vmatprep.subr.bf16.mxu1 %v2506_v11  ;;  %2048 = vmatprep.mubr.f32.mxu0 %v3030_v46 }
  0xc0   : > { %2180 = vmatprep.mubr.f32.mxu1 %v3030_v46  ;;  %2049 = vmatmul.mubr.f32.gmra.mrb[20].mxu0 %v3035_v51 }
  0xc1   : > { %2413 = vmatpush3.bf16.msra.mxu0 %v2410_v10  ;;  %2181 = vmatmul.mubr.f32.gmra.mrb[12].mxu1 %v3035_v51 }
  0xc2   : > { %2509 = vmatpush3.bf16.msra.mxu1 %v2506_v11  ;;  %2415 = vmatprep.subr.bf16.mxu0 %v2414_v18 }
  0xc3   : > { %2511 = vmatprep.subr.bf16.mxu1 %v2510_v19  ;;  %2051 = vmatprep.mubr.f32.mxu0 %v3038_v52 }
  0xc4   : > { %2183 = vmatprep.mubr.f32.mxu1 %v3038_v52  ;;  %2052 = vmatmul.mubr.f32.gmra.mrb[22].mxu0 %v2814_v0 }
  0xc5   : > { %2417 = vmatpush3.bf16.msra.mxu0 %v2414_v18  ;;  %2184 = vmatmul.mubr.f32.gmra.mrb[14].mxu1 %v2814_v0  ;;  %v839_v0 = vld [vmem:[#allocation6 + $0x3f0] sm:$0xff] }
  0xc6   : > { %2513 = vmatpush3.bf16.msra.mxu1 %v2510_v19  ;;  %2419 = vmatprep.subr.bf16.mxu0 %v2418_v25  ;;  %v2430_v50 = vpack.c.bf16 %v840_v47, %v839_v0 }
  0xc7   : > { %2515 = vmatprep.subr.bf16.mxu1 %v2514_v26  ;;  %2086 = vmatprep.mubr.f32.mxu0 %v3009_v27 }
  0xc8   : > { %2218 = vmatprep.mubr.f32.mxu1 %v3055_v29  ;;  %v2530_v29 = vpack.c.bf16 %v1370_v55, %v1369_v54 }
  0xc9   : > { %2421 = vmatpush3.bf16.msra.mxu0 %v2418_v25 }
  0xca   : > { %2517 = vmatpush3.bf16.msra.mxu1 %v2514_v26  ;;  %2423 = vmatprep.subr.bf16.mxu0 %v2422_v35 }
  0xcb   : > { %2519 = vmatprep.subr.bf16.mxu1 %v2518_v36 }
  0xcd   : > { %2425 = vmatpush3.bf16.msra.mxu0 %v2422_v35 }
  0xce   : > { %2521 = vmatpush3.bf16.msra.mxu1 %v2518_v36  ;;  %2427 = vmatprep.subr.bf16.mxu0 %v2426_v43 }
  0xcf   : > { %2523 = vmatprep.subr.bf16.mxu1 %v2522_v44 }
  0xd1   : > { %2429 = vmatpush3.bf16.msra.mxu0 %v2426_v43 }
  0xd2   : > { %2525 = vmatpush3.bf16.msra.mxu1 %v2522_v44  ;;  %2431 = vmatprep.subr.bf16.mxu0 %v2430_v50 }
  0xd3   : > { %2527 = vmatprep.subr.bf16.mxu1 %v2526_v53 }
  0xd5   : > { %2433 = vmatpush3.bf16.msra.mxu0 %v2430_v50 }
  0xd6   : > { %2529 = vmatpush3.bf16.msra.mxu1 %v2526_v53  ;;  %2531 = vmatprep.subr.bf16.mxu0 %v2530_v29 }
  0xd7   : > { %2562 = vmatprep.subr.bf16.mxu1 %v2530_v29 }
  0xd8   : > { %2087 = vmatmul.mubr.f32.vlgmr.msra.gmra.mrb[16].mxu0 %v3014_v30 }
  0xd9   : > { %2219 = vmatmul.mubr.f32.vlgmr.msra.gmra.mrb[8].mxu1 %v3058_v31  ;;  %2533 = vmatpush3.bf16.msra.mxu0 %v2530_v29  ;;  %v2542_v31 = vpack.c.bf16 %v1376_v1, %v1375_v63 }
  0xda   : > { %2570 = vmatpush3.bf16.msra.mxu1 %v2530_v29  ;;  %2089 = vmatprep.mubr.f32.mxu0 %v3019_v41 }
  0xdb   : > { %2221 = vmatprep.mubr.f32.mxu1 %v3062_v62  ;;  %2535 = vmatprep.subr.bf16.mxu0 %v2534_v58  ;;  %v2546_v62 = vpack.c.bf16 %v1378_v3, %v1377_v2 }
  0xdc   : > { %2090 = vmatmul.mubr.f32.gmra.mrb[18].mxu0 %v3022_v42  ;;  %2563 = vmatprep.subr.bf16.mxu1 %v2534_v58 }
  0xdd   : > { %2222 = vmatmul.mubr.f32.gmra.mrb[10].mxu1 %v3066_v6  ;;  %2537 = vmatpush3.bf16.msra.mxu0 %v2534_v58  ;;  %v1379_v6 = vld [vmem:[#allocation6 + $0x450] sm:$0xff] }
  0xde   : > { %2571 = vmatpush3.bf16.msra.mxu1 %v2534_v58  ;;  %2092 = vmatprep.mubr.f32.mxu0 %v3027_v45 }
  0xdf   : > { %2539 = vmatprep.subr.bf16.mxu0 %v2538_v61  ;;  %2564 = vmatprep.subr.bf16.mxu1 %v2538_v61 }
  0xe0   : > { %2093 = vmatmul.mubr.f32.gmra.mrb[20].mxu0 %v3030_v46  ;;  %2224 = vmatprep.mubr.f32.mxu1 %v3069_v7  ;;  %v2550_v7 = vpack.c.bf16 %v1380_v4, %v1379_v6 }
  0xe1   : > { %2541 = vmatpush3.bf16.msra.mxu0 %v2538_v61  ;;  %2095 = vmatprep.mubr.f32.mxu0 %v3035_v51 }
  0xe2   : > { %2572 = vmatpush3.bf16.msra.mxu1 %v2538_v61  ;;  %2543 = vmatprep.subr.bf16.mxu0 %v2542_v31 }
  0xe3   : > { %2565 = vmatprep.subr.bf16.mxu1 %v2542_v31  ;;  %2225 = vmatmul.mubr.f32.gmra.mrb[12].mxu1 %v3074_v14  ;;  %v2554_v14 = vpack.c.bf16 %v1382_v8, %v1381_v5 }
  0xe4   : > { %2096 = vmatmul.mubr.f32.gmra.mrb[22].mxu0 %v3038_v52  ;;  %2227 = vmatprep.mubr.f32.mxu1 %v3076_v15  ;;  %v1384_v15 = vld [vmem:[#allocation6 + $0x478] sm:$0xff] }
  0xe5   : > { %2545 = vmatpush3.bf16.msra.mxu0 %v2542_v31  ;;  %2262 = vmatprep.mubr.f32.mxu0 %v3009_v27  ;;  %v2558_v27 = vpack.c.bf16 %v1384_v15, %v1383_v9 }
  0xe6   : > { %2573 = vmatpush3.bf16.msra.mxu1 %v2542_v31  ;;  %2547 = vmatprep.subr.bf16.mxu0 %v2546_v62 }
  0xe7   : > { %2566 = vmatprep.subr.bf16.mxu1 %v2546_v62  ;;  %2228 = vmatmul.mubr.f32.gmra.mrb[14].mxu1 %v3082_v22 }
  0xe8   : > { %2268 = vmatprep.mubr.f32.mxu1 %v3027_v45  ;;  %v3130_v45 = vld [vmem:[%s3252_s2] ss:$0 sm:$0xff] }
  0xe9   : > { %2549 = vmatpush3.bf16.msra.mxu0 %v2546_v62 }
  0xea   : > { %2574 = vmatpush3.bf16.msra.mxu1 %v2546_v62  ;;  %2551 = vmatprep.subr.bf16.mxu0 %v2550_v7 }
  0xeb   : > { %2567 = vmatprep.subr.bf16.mxu1 %v2550_v7 }
  0xed   : > { %2553 = vmatpush3.bf16.msra.mxu0 %v2550_v7 }
  0xee   : > { %2575 = vmatpush3.bf16.msra.mxu1 %v2550_v7  ;;  %2555 = vmatprep.subr.bf16.mxu0 %v2554_v14 }
  0xef   : > { %2568 = vmatprep.subr.bf16.mxu1 %v2554_v14 }
  0xf1   : > { %2557 = vmatpush3.bf16.msra.mxu0 %v2554_v14 }
  0xf2   : > { %2576 = vmatpush3.bf16.msra.mxu1 %v2554_v14  ;;  %2559 = vmatprep.subr.bf16.mxu0 %v2558_v27 }
  0xf3   : > { %2569 = vmatprep.subr.bf16.mxu1 %v2558_v27 }
  0xf5   : > { %2561 = vmatpush3.bf16.msra.mxu0 %v2558_v27 }
  0xf6   : > { %2577 = vmatpush3.bf16.msra.mxu1 %v2558_v27 }
  0xf8   : > { %2263 = vmatmul.mubr.f32.vlgmr.msra.gmra.mrb[24].mxu0 %v3014_v30 }
  0xf9   : > { %2269 = vmatmul.mubr.f32.vlgmr.msra.gmra.mrb[12].mxu1 %v3030_v46  ;;  %2265 = vmatprep.mubr.f32.mxu0 %v3019_v41 }
  0xfa   : > { %2271 = vmatprep.mubr.f32.mxu1 %v3035_v51 }
  0xfc   : > { %2266 = vmatmul.mubr.f32.gmra.mrb[26].mxu0 %v3022_v42 }
  0xfd   : > { %2272 = vmatmul.mubr.f32.gmra.mrb[14].mxu1 %v3038_v52 }
 0x14b   : > { %v1912_v22 = vpop.f32.mrb[0].mxu0 }
 0x14c   : > { %v387_v10 = vadd.f32 %v1912_v22, %v3130_v45  ;;  %v341_v30 = vpop.f32.mrb[1].mxu0  ;;  %v2000_v11 = vpop.f32.mrb[0].mxu1 }
 0x14d   : > { %v386_v46 = vadd.f32 %v3130_v45, %v341_v30  ;;  %v623_v41 = vpop.f32.mrb[1].mxu1 }
 0x14e   : > { %v395_v12 = vmax.f32 %v387_v10, 0.0 }
 0x14f   : > { %v394_v51 = vmax.f32 %v386_v46, 0.0  ;;  %v1915_v13 = vpop.f32.mrb[2].mxu0 }
 0x150   : > { %v403_v42 = vpack.c.bf16 %v395_v12, %v395_v12  ;;  %v389_v52 = vadd.f32 %v1915_v13, %v3130_v45  ;;  %v351_v16 = vpop.f32.mrb[3].mxu0  ;;  %v2003_v17 = vpop.f32.mrb[2].mxu1 }
 0x151   : > { %v402_v18 = vpack.c.bf16 %v394_v51, %v394_v51  ;;  %v388_v19 = vadd.f32 %v3130_v45, %v351_v16  ;;  %v633_v20 = vpop.f32.mrb[3].mxu1 }
 0x152   : > { %411 = vst [vmem:[%s3137_s9 + $0x10] sm:$0xf] %v403_v42  ;;  %v397_v21 = vmax.f32 %v389_v52, 0.0 }
 0x153   : > { %410 = vst [vmem:[%s3137_s9] sm:$0xf] %v402_v18  ;;  %v396_v23 = vmax.f32 %v388_v19, 0.0  ;;  %v1918_v24 = vpop.f32.mrb[4].mxu0 }
 0x154   : > { %v405_v25 = vpack.c.bf16 %v397_v21, %v397_v21  ;;  %v391_v26 = vadd.f32 %v1918_v24, %v3130_v45  ;;  %v361_v28 = vpop.f32.mrb[5].mxu0  ;;  %v2006_v32 = vpop.f32.mrb[4].mxu1 }
 0x155   : > { %v404_v33 = vpack.c.bf16 %v396_v23, %v396_v23  ;;  %v390_v34 = vadd.f32 %v3130_v45, %v361_v28  ;;  %v643_v35 = vpop.f32.mrb[5].mxu1 }
 0x156   : > { %413 = vst [vmem:[%s3137_s9 + $0x30] sm:$0xf] %v405_v25  ;;  %v399_v36 = vmax.f32 %v391_v26, 0.0 }
 0x157   : > { %412 = vst [vmem:[%s3137_s9 + $0x20] sm:$0xf] %v404_v33  ;;  %v398_v37 = vmax.f32 %v390_v34, 0.0  ;;  %v1921_v38 = vpop.f32.mrb[6].mxu0 }
 0x158   : > { %v407_v39 = vpack.c.bf16 %v399_v36, %v399_v36  ;;  %v393_v40 = vadd.f32 %v1921_v38, %v3130_v45  ;;  %v371_v43 = vpop.f32.mrb[7].mxu0  ;;  %v2009_v44 = vpop.f32.mrb[6].mxu1 }
 0x159   : > { %v406_v0 = vpack.c.bf16 %v398_v37, %v398_v37  ;;  %v392_v47 = vadd.f32 %v3130_v45, %v371_v43  ;;  %v653_v48 = vpop.f32.mrb[7].mxu1 }
 0x15a   : > { %415 = vst [vmem:[%s3137_s9 + $0x50] sm:$0xf] %v407_v39  ;;  %v401_v49 = vmax.f32 %v393_v40, 0.0 }
 0x15b   : > { %414 = vst [vmem:[%s3137_s9 + $0x40] sm:$0xf] %v406_v0  ;;  %v400_v50 = vmax.f32 %v392_v47, 0.0 }
 0x15c   : > { %v409_v53 = vpack.c.bf16 %v401_v49, %v401_v49 }
 0x15d   : > { %v408_v54 = vpack.c.bf16 %v400_v50, %v400_v50 }
 0x15e   : > { %417 = vst [vmem:[%s3137_s9 + $0x70] sm:$0xf] %v409_v53 }
 0x15f   : > { %416 = vst [vmem:[%s3137_s9 + $0x60] sm:$0xf] %v408_v54 }
 0x16b   : > { %v1956_v55 = vpop.f32.mrb[8].mxu0 }
 0x16c   : > { %v663_v29 = vadd.f32 %v2000_v11, %v1956_v55  ;;  %v501_v56 = vpop.f32.mrb[9].mxu0 }
 0x16d   : > { %v662_v57 = vadd.f32 %v623_v41, %v501_v56 }
 0x16e   : > { %v671_v58 = vadd.f32 %v3130_v45, %v663_v29 }
 0x16f   : > { %v670_v59 = vadd.f32 %v3130_v45, %v662_v57  ;;  %v1959_v60 = vpop.f32.mrb[10].mxu0 }
 0x170   : > { %v679_v61 = vmax.f32 %v671_v58, 0.0  ;;  %v665_v63 = vadd.f32 %v2003_v17, %v1959_v60  ;;  %v511_v1 = vpop.f32.mrb[11].mxu0 }
 0x171   : > { %v678_v31 = vmax.f32 %v670_v59, 0.0  ;;  %v664_v2 = vadd.f32 %v633_v20, %v511_v1 }
 0x172   : > { %v687_v3 = vpack.c.bf16 %v679_v61, %v679_v61  ;;  %v673_v62 = vadd.f32 %v3130_v45, %v665_v63 }
 0x173   : > { %v686_v6 = vpack.c.bf16 %v678_v31, %v678_v31  ;;  %v672_v4 = vadd.f32 %v3130_v45, %v664_v2  ;;  %v1962_v7 = vpop.f32.mrb[12].mxu0 }
 0x174   : > { %695 = vst [vmem:[%s3137_s9 + $0x14] sm:$0xf] %v687_v3  ;;  %v681_v5 = vmax.f32 %v673_v62, 0.0  ;;  %v667_v8 = vadd.f32 %v2006_v32, %v1962_v7  ;;  %v521_v14 = vpop.f32.mrb[13].mxu0 }
 0x175   : > { %694 = vst [vmem:[%s3137_s9 + $0x4] sm:$0xf] %v686_v6  ;;  %v680_v9 = vmax.f32 %v672_v4, 0.0  ;;  %v666_v15 = vadd.f32 %v643_v35, %v521_v14 }
 0x176   : > { %v689_v27 = vpack.c.bf16 %v681_v5, %v681_v5  ;;  %v675_v22 = vadd.f32 %v3130_v45, %v667_v8 }
 0x177   : > { %v688_v10 = vpack.c.bf16 %v680_v9, %v680_v9  ;;  %v674_v30 = vadd.f32 %v3130_v45, %v666_v15  ;;  %v1965_v11 = vpop.f32.mrb[14].mxu0 }
 0x178   : > { %697 = vst [vmem:[%s3137_s9 + $0x34] sm:$0xf] %v689_v27  ;;  %v683_v46 = vmax.f32 %v675_v22, 0.0  ;;  %v669_v41 = vadd.f32 %v2009_v44, %v1965_v11  ;;  %v531_v12 = vpop.f32.mrb[15].mxu0 }
 0x179   : > { %696 = vst [vmem:[%s3137_s9 + $0x24] sm:$0xf] %v688_v10  ;;  %v682_v51 = vmax.f32 %v674_v30, 0.0  ;;  %v668_v13 = vadd.f32 %v653_v48, %v531_v12 }
 0x17a   : > { %v691_v42 = vpack.c.bf16 %v683_v46, %v683_v46  ;;  %v677_v52 = vadd.f32 %v3130_v45, %v669_v41 }
 0x17b   : > { %v690_v16 = vpack.c.bf16 %v682_v51, %v682_v51  ;;  %v676_v17 = vadd.f32 %v3130_v45, %v668_v13 }
 0x17c   : > { %699 = vst [vmem:[%s3137_s9 + $0x54] sm:$0xf] %v691_v42  ;;  %v685_v18 = vmax.f32 %v677_v52, 0.0 }
 0x17d   : > { %698 = vst [vmem:[%s3137_s9 + $0x44] sm:$0xf] %v690_v16  ;;  %v684_v19 = vmax.f32 %v676_v17, 0.0 }
 0x17e   : > { %v693_v20 = vpack.c.bf16 %v685_v18, %v685_v18 }
 0x17f   : > { %v692_v21 = vpack.c.bf16 %v684_v19, %v684_v19 }
 0x180   : > { %701 = vst [vmem:[%s3137_s9 + $0x74] sm:$0xf] %v693_v20 }
 0x181   : > { %700 = vst [vmem:[%s3137_s9 + $0x64] sm:$0xf] %v692_v21 }
 0x1ab   : > { %v2088_v23 = vpop.f32.mrb[16].mxu0 }
 0x1ac   : > { %v955_v24 = vadd.f32 %v2088_v23, %v3130_v45  ;;  %v2220_v25 = vpop.f32.mrb[8].mxu1  ;;  %v907_v26 = vpop.f32.mrb[17].mxu0 }
 0x1ad   : > { %v954_v28 = vadd.f32 %v3130_v45, %v907_v26  ;;  %v1321_v32 = vpop.f32.mrb[9].mxu1 }
 0x1ae   : > { %v963_v33 = vmax.f32 %v955_v24, 0.0 }
 0x1af   : > { %v962_v34 = vmax.f32 %v954_v28, 0.0  ;;  %v2091_v35 = vpop.f32.mrb[18].mxu0 }
 0x1b0   : > { %v971_v36 = vpack.c.bf16 %v963_v33, %v963_v33  ;;  %v957_v37 = vadd.f32 %v2091_v35, %v3130_v45  ;;  %v2223_v38 = vpop.f32.mrb[10].mxu1  ;;  %v917_v39 = vpop.f32.mrb[19].mxu0 }
 0x1b1   : > { %v970_v40 = vpack.c.bf16 %v962_v34, %v962_v34  ;;  %v956_v43 = vadd.f32 %v3130_v45, %v917_v39  ;;  %v1331_v44 = vpop.f32.mrb[11].mxu1 }
 0x1b2   : > { %1640 = vst [vmem:[%s3137_s9 + $0x18] sm:$0xf] %v971_v36  ;;  %v965_v0 = vmax.f32 %v957_v37, 0.0 }
 0x1b3   : > { %1639 = vst [vmem:[%s3137_s9 + $0x8] sm:$0xf] %v970_v40  ;;  %v964_v47 = vmax.f32 %v956_v43, 0.0  ;;  %v2094_v48 = vpop.f32.mrb[20].mxu0 }
 0x1b4   : > { %v973_v49 = vpack.c.bf16 %v965_v0, %v965_v0  ;;  %v959_v50 = vadd.f32 %v2094_v48, %v3130_v45  ;;  %v927_v53 = vpop.f32.mrb[21].mxu0 }
 0x1b5   : > { %v972_v54 = vpack.c.bf16 %v964_v47, %v964_v47  ;;  %v958_v55 = vadd.f32 %v3130_v45, %v927_v53 }
 0x1b6   : > { %1642 = vst [vmem:[%s3137_s9 + $0x38] sm:$0xf] %v973_v49  ;;  %v967_v29 = vmax.f32 %v959_v50, 0.0 }
 0x1b7   : > { %1641 = vst [vmem:[%s3137_s9 + $0x28] sm:$0xf] %v972_v54  ;;  %v966_v56 = vmax.f32 %v958_v55, 0.0  ;;  %v2097_v57 = vpop.f32.mrb[22].mxu0 }
 0x1b8   : > { %v975_v58 = vpack.c.bf16 %v967_v29, %v967_v29  ;;  %v961_v59 = vadd.f32 %v2097_v57, %v3130_v45  ;;  %v937_v60 = vpop.f32.mrb[23].mxu0 }
 0x1b9   : > { %v974_v61 = vpack.c.bf16 %v966_v56, %v966_v56  ;;  %v960_v63 = vadd.f32 %v3130_v45, %v937_v60 }
 0x1ba   : > { %1644 = vst [vmem:[%s3137_s9 + $0x58] sm:$0xf] %v975_v58  ;;  %v969_v1 = vmax.f32 %v961_v59, 0.0 }
 0x1bb   : > { %1643 = vst [vmem:[%s3137_s9 + $0x48] sm:$0xf] %v974_v61  ;;  %v968_v31 = vmax.f32 %v960_v63, 0.0 }
 0x1bc   : > { %v977_v2 = vpack.c.bf16 %v969_v1, %v969_v1 }
 0x1bd   : > { %v976_v3 = vpack.c.bf16 %v968_v31, %v968_v31 }
 0x1be   : > { %1646 = vst [vmem:[%s3137_s9 + $0x78] sm:$0xf] %v977_v2 }
 0x1bf   : > { %1645 = vst [vmem:[%s3137_s9 + $0x68] sm:$0xf] %v976_v3 }
 0x1cb   : > { %v2264_v62 = vpop.f32.mrb[24].mxu0 }
 0x1cc   : > { %v2586_v6 = vadd.f32 %v2264_v62, %v2220_v25  ;;  %v2270_v4 = vpop.f32.mrb[12].mxu1  ;;  %v1451_v7 = vpop.f32.mrb[25].mxu0 }
 0x1cd   : > { %v1503_v5 = vadd.f32 %v2270_v4, %v3130_v45  ;;  %v2587_v8 = vadd.f32 %v1451_v7, %v1321_v32  ;;  %v1471_v14 = vpop.f32.mrb[13].mxu1 }
 0x1ce   : > { %v1499_v9 = vadd.f32 %v2586_v6, %v3130_v45  ;;  %v1502_v15 = vadd.f32 %v3130_v45, %v1471_v14 }
 0x1cf   : > { %v1511_v27 = vmax.f32 %v1503_v5, 0.0  ;;  %v1498_v22 = vadd.f32 %v2587_v8, %v3130_v45  ;;  %v2267_v10 = vpop.f32.mrb[26].mxu0 }
 0x1d0   : > { %v1507_v30 = vmax.f32 %v1499_v9, 0.0  ;;  %v1510_v11 = vmax.f32 %v1502_v15, 0.0  ;;  %v2588_v46 = vadd.f32 %v2267_v10, %v2223_v38  ;;  %v2273_v41 = vpop.f32.mrb[14].mxu1  ;;  %v1461_v12 = vpop.f32.mrb[27].mxu0 }
 0x1d1   : > { %v1519_v51 = vpack.c.bf16 %v1511_v27, %v1511_v27  ;;  %v1506_v13 = vmax.f32 %v1498_v22, 0.0  ;;  %v1505_v42 = vadd.f32 %v2273_v41, %v3130_v45  ;;  %v2589_v52 = vadd.f32 %v1461_v12, %v1331_v44  ;;  %v1481_v16 = vpop.f32.mrb[15].mxu1 }
 0x1d2   : > { %v1515_v17 = vpack.c.bf16 %v1507_v30, %v1507_v30  ;;  %v1518_v18 = vpack.c.bf16 %v1510_v11, %v1510_v11  ;;  %v1501_v19 = vadd.f32 %v2588_v46, %v3130_v45  ;;  %v1504_v20 = vadd.f32 %v3130_v45, %v1481_v16 }
 0x1d3   : > { %1652 = vst [vmem:[%s3137_s9 + $0x5c] sm:$0xf] %v1519_v51  ;;  %v1514_v21 = vpack.c.bf16 %v1506_v13, %v1506_v13  ;;  %v1513_v23 = vmax.f32 %v1505_v42, 0.0  ;;  %v1500_v24 = vadd.f32 %v2589_v52, %v3130_v45 }
 0x1d4   : > { %1648 = vst [vmem:[%s3137_s9 + $0x1c] sm:$0xf] %v1515_v17  ;;  %1651 = vst [vmem:[%s3137_s9 + $0x4c] sm:$0xf] %v1518_v18  ;;  %v1509_v25 = vmax.f32 %v1501_v19, 0.0  ;;  %v1512_v26 = vmax.f32 %v1504_v20, 0.0 }
 0x1d5   : > { %1647 = vst [vmem:[%s3137_s9 + $0xc] sm:$0xf] %v1514_v21  ;;  %v1521_v28 = vpack.c.bf16 %v1513_v23, %v1513_v23  ;;  %v1508_v32 = vmax.f32 %v1500_v24, 0.0 }
 0x1d6   : > { %v1517_v33 = vpack.c.bf16 %v1509_v25, %v1509_v25  ;;  %v1520_v34 = vpack.c.bf16 %v1512_v26, %v1512_v26 }
 0x1d7   : > { %1654 = vst [vmem:[%s3137_s9 + $0x7c] sm:$0xf] %v1521_v28  ;;  %v1516_v45 = vpack.c.bf16 %v1508_v32, %v1508_v32 }
 0x1d8   : > { %1650 = vst [vmem:[%s3137_s9 + $0x3c] sm:$0xf] %v1517_v33  ;;  %1653 = vst [vmem:[%s3137_s9 + $0x6c] sm:$0xf] %v1520_v34 }
 0x1d9   : > { %1649 = vst [vmem:[%s3137_s9 + $0x2c] sm:$0xf] %v1516_v45 }
 0x1da   : > { %2751 = shalt.err (!%p2748_p7)
}
 0x1db   : > { %s2752_s22 = scalar_lea.hbm %s3200_s27, 2048  ;;  %s2756_s11 = scalar_lea.hbm %s3253_s3, 4096 }
 0x1dc   : > { %p2753_p9 = scmp.ne.s32.totalorder %s3200_s27, %s2752_s22  ;;  %p2757_p5 = scmp.lt.u32.totalorder %s3200_s27, %s3253_s3 }
 0x1dd   : > { %p2758_p11 = scmp.lt.u32.totalorder %s2756_s11, %s2752_s22  ;;  %p2760_p4 = scmp.lt.u32.totalorder %s2752_s22, %s3200_s27 }
 0x1de   : > { %p2754_p1 = pnand %p2753_p9, %p2932_p12 }
 0x1df   : > { %p2759_p2 = por %p2758_p11, %p2757_p5 }
 0x1e0   : > { %p2755_p0 = pneg %p2754_p1 }
 0x1e1   : > { %p2761_p6 = por %p2760_p4, %p2759_p2 }
 0x1e3   : > { %p2762_p8 = pnand %p2761_p6, %p2755_p0 }
 0x1e5   : > { %2765 = shalt.err (!%p2762_p8)
}
 0x1e6   : > { %s2816_s8 = smov 128   ;;  %s2817_s9 = smov 8  }
 0x1e7   : > { %2624 = dma.vmem_to_hbm [thread:$0]  (%p2932_p12), %s3202_s25, 2048, %s3200_s27, %s1531_s16, %s2816_s8, %s2816_s8, %s2817_s9  }
 0x1e8 PF: > { %s1559_s4 = sand.u32 1, %s2796_s12   ;;  %p3268_p10 = scmp.ne.s32.totalorder %s3258_s19, 0 }
 0x1e9   : > { %p3269_p13 = scmp.ge.s32.totalorder %s2808_s15, 2  ;;  %s1560_s26 = scalar_lea.sflag [#allocation5], %s1559_s4 }
 0x1eb   : > { %p2635_p3 = pnand %p3269_p13, %p3268_p10 }
 0x1ed   : > { %2791 = dma.done.wait (!%p2635_p3), %s1560_s26, 2048  }
 0x1ee   : > { %2793 = vsyncadd (!%p2635_p3), %s1560_s26, 4294965248  ;;  %p17_p7 = scmp.ge.s32.totalorder %s2894_s24, 4   ;;  %s3270_s12 = smov %s2800_s13 }
 0x1ef   : > { %s3271_s13 = smov %s2804_s14  ;;  %s3272_s14 = smov %s2928_s17 }
 0x1f0   : > { %s3273_s15 = smov %s2894_s24  ;;  %19 = sbr.rel (!%p17_p7) target bundleno = 6 (0x6), region = 92 }
 0x1f7   :  { %1565 = vsyncpa [#allocation4], 1 }
 0x1f8   :  { %1567 = vsyncpa [#allocation4 + $0x1], 1 }
 0x1f9   :  { %1568 = vsyncpa [#allocation7], 1 }
 0x1fa   :  { %1569 = vsyncpa [#allocation5], 1 }
 0x1fb   :  { %1571 = vsyncpa [#allocation5 + $0x1], 1 }

</bundles_post_ra>
